<compile_context>
chip_gen: v7x
topology: tpu7x:2x2x1
jax: 0.10.0
libtpu: 0.0.40
codegen_flags: <defaults>
</compile_context>

<pallas_src>
import jax
import jax.numpy as jnp
from jax import lax
from jax.experimental import pallas as pl
from jax.experimental.pallas import tpu as pltpu


def _round_up(a, b):
    return ((a + b - 1) // b) * b


def _denoiser_kernel(xT_ref, tT_ref, w1T_ref, b1_ref, w2T_ref, b2_ref,
                     w3T_ref, b3_ref, oT_ref):
    xT = xT_ref[...]                           # (2, tm)   f32
    tT = tT_ref[...]                           # (1, tm)   f32
    w1T = w1T_ref[...]                         # (dim, 3)  f32

    # fc1: K=3 contraction as broadcast FMAs on the VPU (features on sublanes,
    # batch on lanes -> every vreg is lane-dense).
    a1 = (w1T[:, 0:1] * xT[0:1, :]
          + w1T[:, 1:2] * xT[1:2, :]
          + w1T[:, 2:3] * tT
          + b1_ref[...])                       # (dim, tm)
    a1 = jnp.maximum(a1, 0.1 * a1)             # LeakyReLU(0.1)

    # fc2 on the MXU: (dim, dim) @ (dim, tm) -> (dim, tm), f32 accumulation.
    a2 = jnp.dot(w2T_ref[...], a1.astype(w2T_ref.dtype),
                 preferred_element_type=jnp.float32) + b2_ref[...]
    a2 = jnp.maximum(a2, 0.1 * a2)             # LeakyReLU(0.1)

    # fc3 on the MXU: (2, dim) @ (dim, tm) -> (2, tm); lane-dense store.
    outT = jnp.dot(w3T_ref[...], a2.astype(w3T_ref.dtype),
                   preferred_element_type=jnp.float32) + b3_ref[...]
    oT_ref[...] = outT.astype(oT_ref.dtype)


def denoiser_forward(x, t, params, *, tm=1024, use_bf16=True):
    """x: [N, 2], t: [N, 1] -> out: [N, 2]."""
    w1, b1, w2, b2, w3, b3 = params
    N = x.shape[0]
    dim = w1.shape[1]

    mm_dtype = jnp.bfloat16 if use_bf16 else jnp.float32

    # Weights/biases in the transposed (feature-on-sublanes) orientation.
    w1T = w1.T.astype(jnp.float32)             # (dim, 3)   VPU path stays f32
    b1c = b1.reshape(dim, 1).astype(jnp.float32)
    w2T = w2.T.astype(mm_dtype)                # (dim, dim) MXU operand
    b2c = b2.reshape(dim, 1).astype(jnp.float32)
    w3T = w3.T.astype(mm_dtype)                # (2, dim)   MXU operand
    b3c = b3.reshape(2, 1).astype(jnp.float32)

    # Batch tile: lane-dense multiple of 128.  Prefer >= 2 grid steps so the
    # "parallel" axis spans both TensorCores on v7x; weights/biases stay
    # resident across steps (constant-index blocks).
    tm = max(128, _round_up(int(tm), 128))
    n_ceil = _round_up(N, 128)
    if tm >= n_ceil:
        tm = _round_up(n_ceil // 2, 128) if n_ceil >= 256 else n_ceil
    N_pad = _round_up(N, tm)

    xT = x.astype(jnp.float32).T               # (2, N)
    tT = t.astype(jnp.float32).T               # (1, N)
    if N_pad != N:
        # TODO(synk): for very large N, handle the ragged last tile in-kernel
        # instead of padding (saves one extra HBM read+write of the inputs).
        xT = jnp.pad(xT, ((0, 0), (0, N_pad - N)))
        tT = jnp.pad(tT, ((0, 0), (0, N_pad - N)))

    grid = (N_pad // tm,)
    const = lambda i: (0, 0)                   # weights/biases: resident blocks

    flops = 2 * N_pad * (3 * dim + dim * dim + dim * 2)
    weight_bytes = sum(int(a.size) * a.dtype.itemsize
                       for a in (w1T, b1c, w2T, b2c, w3T, b3c))
    bytes_accessed = (2 + 1 + 2) * N_pad * 4 + weight_bytes

    out_t = pl.pallas_call(
        _denoiser_kernel,
        out_shape=jax.ShapeDtypeStruct((2, N_pad), jnp.float32),
        grid_spec=pltpu.PrefetchScalarGridSpec(
            num_scalar_prefetch=0,
            grid=grid,
            in_specs=[
                pl.BlockSpec((2, tm), lambda i: (0, i)),    # x^T tile
                pl.BlockSpec((1, tm), lambda i: (0, i)),    # t^T tile
                pl.BlockSpec((dim, 3), const),              # W1^T
                pl.BlockSpec((dim, 1), const),              # b1
                pl.BlockSpec((dim, dim), const),            # W2^T
                pl.BlockSpec((dim, 1), const),              # b2
                pl.BlockSpec((2, dim), const),              # W3^T
                pl.BlockSpec((2, 1), const),                # b3
            ],
            out_specs=pl.BlockSpec((2, tm), lambda i: (0, i)),
        ),
        compiler_params=pltpu.CompilerParams(
            dimension_semantics=("parallel",),
        ),
        cost_estimate=pl.CostEstimate(
            flops=flops, transcendentals=0, bytes_accessed=bytes_accessed),
    )(xT, tT, w1T, b1c, w2T, b2c, w3T, b3c)

    return out_t[:, :N].T                      # slice padding BEFORE transpose


def init_params(key, dim=64):
    """Shapes match nn.Linear(3,dim), (dim,dim), (dim,2).
    Weights stored as [in_features, out_features]; biases as 1-D."""
    k1, k2, k3, k4, k5, k6 = jax.random.split(key, 6)

    def uniform(k, shape, fan_in):
        bound = 1.0 / jnp.sqrt(fan_in)
        return jax.random.uniform(k, shape, jnp.float32, -bound, bound)

    w1 = uniform(k1, (3, dim), 3)
    b1 = uniform(k2, (dim,), 3)
    w2 = uniform(k3, (dim, dim), dim)
    b2 = uniform(k4, (dim,), dim)
    w3 = uniform(k5, (dim, 2), dim)
    b3 = uniform(k6, (2,), dim)
    return (w1, b1, w2, b2, w3, b3)


def denoiser_reference(x, t, params):
    w1, b1, w2, b2, w3, b3 = params
    hp = lax.Precision.HIGHEST
    h = jnp.concatenate([x, t], axis=-1)
    lrelu = lambda v: jnp.where(v > 0, v, 0.1 * v)
    h = lrelu(jnp.dot(h, w1, precision=hp) + b1)
    h = lrelu(jnp.dot(h, w2, precision=hp) + b2)
    return jnp.dot(h, w3, precision=hp) + b3


if __name__ == "__main__":
    key = jax.random.PRNGKey(0)
    kx, kt, kp = jax.random.split(key, 3)

    N, dim = 2000, 64                                   # exercises padding + 2-step grid
    x = jax.random.normal(kx, (N, 2), jnp.float32)      # 2-D data points
    t = jax.random.uniform(kt, (N, 1), jnp.float32)     # diffusion timestep
    params = init_params(kp, dim=dim)

    ref = denoiser_reference(x, t, params)

    # f32 MXU operands: bit-accurate path.
    out_f32 = jax.block_until_ready(
        denoiser_forward(x, t, params, tm=1024, use_bf16=False))
    assert out_f32.shape == (N, 2)
    assert jnp.allclose(out_f32, ref, atol=1e-4, rtol=1e-4)

    # Default bf16 MXU operands (native v6e/v7x datapath), f32 accumulation.
    out_bf16 = jax.block_until_ready(
        denoiser_forward(x, t, params, tm=1024, use_bf16=True))
    assert out_bf16.shape == (N, 2)
    assert jnp.allclose(out_bf16, ref, atol=5e-2, rtol=5e-2)

    print("KERNEL_OK")
</pallas_src>

<mosaic_0001>
module attributes {stable_mosaic.version = 11 : i64} {
  func.func @_denoiser_kernel(%arg0: i32, %arg1: memref<2x1024xf32, #tpu.memory_space<vmem>>, %arg2: memref<1x1024xf32, #tpu.memory_space<vmem>>, %arg3: memref<64x3xf32, #tpu.memory_space<vmem>>, %arg4: memref<64x1xf32, #tpu.memory_space<vmem>>, %arg5: memref<64x64xf32, #tpu.memory_space<vmem>>, %arg6: memref<64x1xf32, #tpu.memory_space<vmem>>, %arg7: memref<2x64xf32, #tpu.memory_space<vmem>>, %arg8: memref<2x1xf32, #tpu.memory_space<vmem>>, %arg9: memref<2x1024xf32, #tpu.memory_space<vmem>>) attributes {dimension_semantics = [#tpu.dimension_semantics<parallel>], iteration_bounds = array<i64: 2>, scalar_prefetch = 0 : i64, scratch_operands = 0 : i64, tpu.core_type = #tpu.core_type<tc>, window_params = [{transform_indices = @transform_0, window_bounds = array<i64: 2, 1024>}, {transform_indices = @transform_1, window_bounds = array<i64: 1, 1024>}, {pipeline_mode = #tpu.pipeline_mode<synchronous>, transform_indices = @transform_2, window_bounds = array<i64: 64, 3>}, {pipeline_mode = #tpu.pipeline_mode<synchronous>, transform_indices = @transform_3, window_bounds = array<i64: 64, 1>}, {pipeline_mode = #tpu.pipeline_mode<synchronous>, transform_indices = @transform_4, window_bounds = array<i64: 64, 64>}, {pipeline_mode = #tpu.pipeline_mode<synchronous>, transform_indices = @transform_5, window_bounds = array<i64: 64, 1>}, {pipeline_mode = #tpu.pipeline_mode<synchronous>, transform_indices = @transform_6, window_bounds = array<i64: 2, 64>}, {pipeline_mode = #tpu.pipeline_mode<synchronous>, transform_indices = @transform_7, window_bounds = array<i64: 2, 1>}, {transform_indices = @transform_8, window_bounds = array<i64: 2, 1024>}]} {
    %c0 = arith.constant 0 : index
    %c0_0 = arith.constant 0 : index
    %0 = vector.load %arg1[%c0, %c0_0] : memref<2x1024xf32, #tpu.memory_space<vmem>>, vector<2x1024xf32>
    %c0_1 = arith.constant 0 : index
    %c0_2 = arith.constant 0 : index
    %1 = vector.load %arg2[%c0_1, %c0_2] : memref<1x1024xf32, #tpu.memory_space<vmem>>, vector<1x1024xf32>
    %c0_3 = arith.constant 0 : index
    %c0_4 = arith.constant 0 : index
    %2 = vector.load %arg3[%c0_3, %c0_4] : memref<64x3xf32, #tpu.memory_space<vmem>>, vector<64x3xf32>
    %3 = vector.extract_strided_slice %2 {offsets = [0, 0], sizes = [64, 1], strides = [1, 1]} : vector<64x3xf32> to vector<64x1xf32>
    %4 = vector.extract_strided_slice %0 {offsets = [0, 0], sizes = [1, 1024], strides = [1, 1]} : vector<2x1024xf32> to vector<1x1024xf32>
    %5 = vector.broadcast %3 : vector<64x1xf32> to vector<64x1024xf32>
    %6 = vector.broadcast %4 : vector<1x1024xf32> to vector<64x1024xf32>
    %7 = arith.mulf %5, %6 : vector<64x1024xf32>
    %8 = vector.extract_strided_slice %2 {offsets = [0, 1], sizes = [64, 1], strides = [1, 1]} : vector<64x3xf32> to vector<64x1xf32>
    %9 = vector.extract_strided_slice %0 {offsets = [1, 0], sizes = [1, 1024], strides = [1, 1]} : vector<2x1024xf32> to vector<1x1024xf32>
    %10 = vector.broadcast %8 : vector<64x1xf32> to vector<64x1024xf32>
    %11 = vector.broadcast %9 : vector<1x1024xf32> to vector<64x1024xf32>
    %12 = arith.mulf %10, %11 : vector<64x1024xf32>
    %13 = arith.addf %7, %12 : vector<64x1024xf32>
    %14 = vector.extract_strided_slice %2 {offsets = [0, 2], sizes = [64, 1], strides = [1, 1]} : vector<64x3xf32> to vector<64x1xf32>
    %15 = vector.broadcast %14 : vector<64x1xf32> to vector<64x1024xf32>
    %16 = vector.broadcast %1 : vector<1x1024xf32> to vector<64x1024xf32>
    %17 = arith.mulf %15, %16 : vector<64x1024xf32>
    %18 = arith.addf %13, %17 : vector<64x1024xf32>
    %c0_5 = arith.constant 0 : index
    %c0_6 = arith.constant 0 : index
    %19 = vector.load %arg4[%c0_5, %c0_6] : memref<64x1xf32, #tpu.memory_space<vmem>>, vector<64x1xf32>
    %20 = vector.broadcast %19 : vector<64x1xf32> to vector<64x1024xf32>
    %21 = arith.addf %18, %20 : vector<64x1024xf32>
    %cst = arith.constant 1.000000e-01 : f32
    %22 = vector.broadcast %cst : f32 to vector<64x1024xf32>
    %23 = arith.mulf %22, %21 : vector<64x1024xf32>
    %24 = arith.maximumf %21, %23 : vector<64x1024xf32>
    %c0_7 = arith.constant 0 : index
    %c0_8 = arith.constant 0 : index
    %25 = vector.load %arg5[%c0_7, %c0_8] : memref<64x64xf32, #tpu.memory_space<vmem>>, vector<64x64xf32>
    %cst_9 = arith.constant dense<0.000000e+00> : vector<64x1024xf32>
    %26 = tpu.matmul %25, %24, %cst_9 {dimension_numbers = #tpu.dot_dimension_numbers<[1], [0], [0], [1], [0, 0, 1, 1], [], []>} : vector<64x64xf32>, vector<64x1024xf32>, vector<64x1024xf32> -> vector<64x1024xf32>
    %c0_10 = arith.constant 0 : index
    %c0_11 = arith.constant 0 : index
    %27 = vector.load %arg6[%c0_10, %c0_11] : memref<64x1xf32, #tpu.memory_space<vmem>>, vector<64x1xf32>
    %28 = vector.broadcast %27 : vector<64x1xf32> to vector<64x1024xf32>
    %29 = arith.addf %26, %28 : vector<64x1024xf32>
    %cst_12 = arith.constant 1.000000e-01 : f32
    %30 = vector.broadcast %cst_12 : f32 to vector<64x1024xf32>
    %31 = arith.mulf %30, %29 : vector<64x1024xf32>
    %32 = arith.maximumf %29, %31 : vector<64x1024xf32>
    %c0_13 = arith.constant 0 : index
    %c0_14 = arith.constant 0 : index
    %33 = vector.load %arg7[%c0_13, %c0_14] : memref<2x64xf32, #tpu.memory_space<vmem>>, vector<2x64xf32>
    %cst_15 = arith.constant dense<0.000000e+00> : vector<2x1024xf32>
    %34 = tpu.matmul %33, %32, %cst_15 {dimension_numbers = #tpu.dot_dimension_numbers<[1], [0], [0], [1], [0, 0, 1, 1], [], []>} : vector<2x64xf32>, vector<64x1024xf32>, vector<2x1024xf32> -> vector<2x1024xf32>
    %c0_16 = arith.constant 0 : index
    %c0_17 = arith.constant 0 : index
    %35 = vector.load %arg8[%c0_16, %c0_17] : memref<2x1xf32, #tpu.memory_space<vmem>>, vector<2x1xf32>
    %36 = vector.broadcast %35 : vector<2x1xf32> to vector<2x1024xf32>
    %37 = arith.addf %34, %36 : vector<2x1024xf32>
    %c0_18 = arith.constant 0 : index
    %c0_19 = arith.constant 0 : index
    %38 = vector.load %arg9[%c0_18, %c0_19] : memref<2x1024xf32, #tpu.memory_space<vmem>>, vector<2x1024xf32>
    tpu.vector_store %arg9[%c0_18, %c0_19], %37 {strides = array<i32>} : memref<2x1024xf32, #tpu.memory_space<vmem>>, vector<2x1024xf32>,
    return
  }
  func.func @transform_0(%arg0: i32) -> (i32, i32) {
    %c0_i32 = arith.constant 0 : i32
    %c0_i32_0 = arith.constant 0 : i32
    return %c0_i32, %arg0 : i32, i32
  }
  func.func @transform_1(%arg0: i32) -> (i32, i32) {
    %c0_i32 = arith.constant 0 : i32
    %c0_i32_0 = arith.constant 0 : i32
    return %c0_i32, %arg0 : i32, i32
  }
  func.func @transform_2(%arg0: i32) -> (i32, i32) {
    %c0_i32 = arith.constant 0 : i32
    %c0_i32_0 = arith.constant 0 : i32
    %c0_i32_1 = arith.constant 0 : i32
    return %c0_i32, %c0_i32_0 : i32, i32
  }
  func.func @transform_3(%arg0: i32) -> (i32, i32) {
    %c0_i32 = arith.constant 0 : i32
    %c0_i32_0 = arith.constant 0 : i32
    %c0_i32_1 = arith.constant 0 : i32
    return %c0_i32, %c0_i32_0 : i32, i32
  }
  func.func @transform_4(%arg0: i32) -> (i32, i32) {
    %c0_i32 = arith.constant 0 : i32
    %c0_i32_0 = arith.constant 0 : i32
    %c0_i32_1 = arith.constant 0 : i32
    return %c0_i32, %c0_i32_0 : i32, i32
  }
  func.func @transform_5(%arg0: i32) -> (i32, i32) {
    %c0_i32 = arith.constant 0 : i32
    %c0_i32_0 = arith.constant 0 : i32
    %c0_i32_1 = arith.constant 0 : i32
    return %c0_i32, %c0_i32_0 : i32, i32
  }
  func.func @transform_6(%arg0: i32) -> (i32, i32) {
    %c0_i32 = arith.constant 0 : i32
    %c0_i32_0 = arith.constant 0 : i32
    %c0_i32_1 = arith.constant 0 : i32
    return %c0_i32, %c0_i32_0 : i32, i32
  }
  func.func @transform_7(%arg0: i32) -> (i32, i32) {
    %c0_i32 = arith.constant 0 : i32
    %c0_i32_0 = arith.constant 0 : i32
    %c0_i32_1 = arith.constant 0 : i32
    return %c0_i32, %c0_i32_0 : i32, i32
  }
  func.func @transform_8(%arg0: i32) -> (i32, i32) {
    %c0_i32 = arith.constant 0 : i32
    %c0_i32_0 = arith.constant 0 : i32
    return %c0_i32, %arg0 : i32, i32
  }
}

</mosaic_0001>

<bundles_post_ra>
// kernel: tpu_custom_call.1
= control target key start
LH: loop header
LB: loop body
LE: loop exit
PB: predicated region body
PF: predicated region fallthrough
CT: control target
= control target key end

     0   :  { %13 = vsyncpa [#allocation3], 0  ;;  %s3834_s0 = inlined_call_operand.vmem [shape: f32[2,2048], index: 0, kind: input, shape index: {}]   ;;  %s3835_s1 = inlined_call_operand.vmem [shape: f32[1,2048], index: 1, kind: input, shape index: {}]   ;;  %s3836_s2 = inlined_call_operand.vmem [shape: f32[64,3], index: 2, kind: input, shape index: {}]   ;;  %s3837_s3 = inlined_call_operand.vmem [shape: f32[64,1], index: 3, kind: input, shape index: {}]   ;;  %s3838_s4 = inlined_call_operand.vmem [shape: f32[64,64], index: 4, kind: input, shape index: {}]   ;;  %s3839_s5 = inlined_call_operand.vmem [shape: f32[64,1], index: 5, kind: input, shape index: {}]   ;;  %s3840_s6 = inlined_call_operand.vmem [shape: f32[2,64], index: 6, kind: input, shape index: {}]   ;;  %s3841_s7 = inlined_call_operand.vmem [shape: f32[2,1], index: 7, kind: input, shape index: {}]   ;;  %s3842_s8 = inlined_call_operand.hbm [shape: f32[2,2048], index: 8, kind: output, shape index: {}]  }
   0x1   :  { %15 = vsyncpa [#allocation3 + $0x1], 0  ;;  %s2624_s27 = smov 0   ;;  %s2626_s28 = smov 0  }
   0x2   :  { %s2628_s29 = smov 0   ;;  %s2630_s30 = smov 0  }
   0x3 LB: > { %s2645_s9 = sadd.s32 4294967295, %s2571_s30   ;;  %s2272_s10 = sadd.s32 4294967294, %s2571_s30   ;;  %s2571_s30 = sphi %s2630_s30, %s4050_s30   ;;  %s2567_s29 = sphi %s2628_s29, %s4049_s29   ;;  %s2563_s28 = sphi %s2626_s28, %s4048_s28   ;;  %s2559_s27 = sphi %s2624_s27, %s4047_s27  }
   0x4   : > { %s2649_s11 = sadd.s32 1, %s2571_s30   ;;  %s206_s12 = sadd.s32 1, %s2567_s29 }
   0x5   : > { %s203_s13 = ssub.s32 %s2571_s30, %s2649_s11  ;;  %p216_p0 = scmp.ne.s32.totalorder %s2567_s29, %s2563_s28 }
   0x6   : > { %p204_p1 = scmp.eq.s32.totalorder %s203_s13, 0  ;;  %p217_p2 = scmp.eq.s32.totalorder %s2645_s9, 1 }
   0x7   : > { %p222_p3 = scmp.ne.s32.totalorder %s2563_s28, %s2559_s27  ;;  %p223_p4 = scmp.eq.s32.totalorder %s2272_s10, 1 }
   0x8   : > { %s2660_s14 = scalar_select %p204_p1, %s2567_s29, %s206_s12  }
   0x9   : > { %p2662_p5 = por %p217_p2, %p216_p0  ;;  %p2666_p6 = por %p223_p4, %p222_p3 }
   0xa   : > { %p2275_p7 = scmp.ge.s32.totalorder %s2571_s30, 1  ;;  %p276_p8 = scmp.lt.s32.totalorder %s2571_s30, 3 }
   0xc   : > { %p277_p9 = pnand %p2275_p7, %p276_p8 }
   0xe   : > { %280 = sbr.rel (%p277_p9) target bundleno = 794 (0x31a), region = 52 }
  0x15   : > { %v329_v0 = vld [vmem:[%s3836_s2] sm:$0xff]  ;;  %v2573_v1 = vmov 2   ;;  %v2574_v2 = vmov 1   ;;  %v331_v3 = vld [vmem:[%s3836_s2 + $0x10] sm:$0xff]  ;;  %v330_v4 = vld [vmem:[%s3836_s2 + $0x8] sm:$0xff]  ;;  %v2575_v7 = vmov 0   ;;  %v379_v29 = vlaneseq }
  0x16   : > { %2495 = vset.pattern.permute.xlu0 %v2573_v1  ;;  %2494 = vset.pattern.permute.xlu1 %v2574_v2  ;;  %v334_v5 = vld [vmem:[%s3836_s2 + $0x28] sm:$0xff]  ;;  %v333_v6 = vld [vmem:[%s3836_s2 + $0x20] sm:$0xff]  ;;  %v336_v8 = vld [vmem:[%s3836_s2 + $0x38] sm:$0xff]  ;;  %s2277_s24 = sshll.u32 %s2645_s9, 3  ;;  %v3843_v26 = vmov 0.0   ;;  %vm1244_vm0 = vcmask 523264  }
  0x17   : > { %748 = vperm.xlu0 %2495, %v329_v0   ;;  %516 = vperm.xlu1 %2494, %v329_v0   ;;  %v332_v9 = vld [vmem:[%s3836_s2 + $0x18] sm:$0xff]  ;;  %v948_v10 = vld [vmem:[%s3837_s3] sm:$0xff]  ;;  %v949_v11 = vld [vmem:[%s3837_s3 + $0x8] sm:$0xff]  ;;  %p315_p10 = scmp.lt.s32.totalorder %s2277_s24, 15  ;;  %v2755_v30 = vshrl.u32 %v379_v29, 7  ;;  %s311_s12 = sand.u32 1, %s2563_s28  }
  0x18   : > { %v335_v12 = vld [vmem:[%s3836_s2 + $0x30] sm:$0xff]  ;;  %v952_v13 = vld [vmem:[%s3837_s3 + $0x20] sm:$0xff]  ;;  %v955_v14 = vld [vmem:[%s3837_s3 + $0x38] sm:$0xff]  ;;  %1333 = vmatprep.mubr.f32.mxu0 %v3843_v26  ;;  %1446 = vmatprep.mubr.f32.mxu1 %v3843_v26  ;;  %s2321_s18 = sshll.u32 %s2645_s9, 8  ;;  %s2190_s23 = scalar_lea.sflag [#allocation3], %s311_s12 }
  0x19   : > { %v1197_v15 = vld [vmem:[%s3839_s5 + $0x8] sm:$0xff]  ;;  %v1199_v16 = vld [vmem:[%s3839_s5 + $0x18] sm:$0xff]  ;;  %v950_v17 = vld [vmem:[%s3837_s3 + $0x10] sm:$0xff]  ;;  %s4052_s24 = smov (!%p315_p10, %s2277_s24), 15  ;;  %3893 = vst [vmem:[#allocation5_spill] sm:$0xff] %v2755_v30  ;;  %v553_v31 = vsub.s32 3, %v2755_v30 }
  0x1a   : > { %v1201_v18 = vld [vmem:[%s3839_s5 + $0x28] sm:$0xff]  ;;  %v951_v19 = vld [vmem:[%s3837_s3 + $0x18] sm:$0xff]  ;;  %v954_v22 = vld [vmem:[%s3837_s3 + $0x30] sm:$0xff]  ;;  %s2278_s13 = sshll.u32 %s4052_s24, 1  ;;  %s323_s22 = scalar_lea.vmem %s3835_s1, %s4052_s24  ;;  %v561_v33 = vsub.s32 7, %v2755_v30  ;;  %v549_v34 = vsub.s32 1, %v2755_v30 }
  0x1b   : > { %756 = vperm.xlu0 %2495, %v331_v3   ;;  %520 = vperm.xlu1 %2494, %v330_v4   ;;  %v1203_v20 = vld [vmem:[%s3839_s5 + $0x38] sm:$0xff]  ;;  %v953_v21 = vld [vmem:[%s3837_s3 + $0x28] sm:$0xff]  ;;  %v1196_v23 = vld [vmem:[%s3839_s5] sm:$0xff]  ;;  %s318_s19 = scalar_lea.vmem %s3834_s0, %s2278_s13  ;;  %v557_v35 = vsub.s32 5, %v2755_v30  ;;  %v381_v36 = vsub.s32 0, %v2755_v30  ;;  %v385_v39 = vsub.s32 2, %v2755_v30 }
  0x1c   : > { %v1198_v24 = vld [vmem:[%s3839_s5 + $0x10] sm:$0xff]  ;;  %v1200_v25 = vld [vmem:[%s3839_s5 + $0x20] sm:$0xff]  ;;  %v327_v41 = vld [vmem:[%s318_s19 + $0x8] sm:$0xff]  ;;  %v393_v42 = vsub.s32 6, %v2755_v30  ;;  %v389_v44 = vsub.s32 4, %v2755_v30  ;;  %s2276_s13 = sshll.u32 %s311_s12, 4 }
  0x1d   : > { %v1202_v27 = vld [vmem:[%s3839_s5 + $0x30] sm:$0xff]  ;;  %v1850_v28 = vld [vmem:[%s3841_s7] sm:$0x3]  ;;  %v402_v55 = vrot.slane %v327_v41, %v385_v39  ;;  %v570_v56 = vrot.slane %v327_v41, %v553_v31  ;;  %v578_v57 = vrot.slane %v327_v41, %v561_v33  ;;  %v398_v60 = vrot.slane %v327_v41, %v381_v36  ;;  %s313_s17 = scalar_lea.vmem [#allocation2], %s2276_s13  ;;  %s2578_s9 = smov [#allocation2]  }
  0x1e   : > { %v326_v32 = vld [vmem:[%s318_s19] sm:$0xff]  ;;  %v410_v59 = vrot.slane %v327_v41, %v393_v42  ;;  %v566_v61 = vrot.slane %v327_v41, %v549_v34  ;;  %s2204_s19 = sshll.u32 %s313_s17, 4  ;;  %s2513_s25 = sshll.u32 %s2578_s9, 4  ;;  %s3794_s19 = int_to_ptr.vmem [resolvable:$true] %s2204_s19  ;;  %s2514_s25 = int_to_ptr.vmem [resolvable:$false] %s2513_s25 }
  0x1f   : > { %768 = vperm.xlu0 %2495, %v334_v5   ;;  %2496 = vset.pattern.permute.xlu1 %v2573_v1  ;;  %v554_v37 = vrot.slane %v326_v32, %v553_v31  ;;  %v328_v38 = vld [vmem:[%s323_s22] sm:$0xff]  ;;  %v562_v40 = vrot.slane %v326_v32, %v561_v33  ;;  %v550_v43 = vrot.slane %v326_v32, %v549_v34  ;;  %s3792_s22 = scalar_lea.hbm %s3842_s8, %s2321_s18  ;;  %s2509_s24 = scalar_lea.vmem %s3794_s19, 256 }
  0x20   : > { %752 = vperm.xlu1 %2496, %v330_v4   ;;  %v558_v45 = vrot.slane %v326_v32, %v557_v35  ;;  %v2773_v47 = vrot.slane %v328_v38, %v549_v34  ;;  %v2775_v48 = vrot.slane %v328_v38, %v553_v31  ;;  %v2777_v49 = vrot.slane %v328_v38, %v381_v36  ;;  %p2510_p11 = scmp.ne.s32.totalorder %s3794_s19, %s2509_s24  ;;  %s2515_s26 = scalar_lea.vmem %s2514_s25, 512 }
  0x21   : > { %v2771_v46 = vrot.slane %v554_v37, %v549_v34  ;;  %v386_v50 = vrot.slane %v326_v32, %v385_v39  ;;  %v394_v51 = vrot.slane %v326_v32, %v393_v42  ;;  %v382_v52 = vrot.slane %v326_v32, %v381_v36  ;;  %p2516_p0 = scmp.lt.s32.totalorder %s3794_s19, %s2514_s25  ;;  %p2517_p1 = scmp.lt.s32.totalorder %s2515_s26, %s2509_s24 }
  0x22   : > { %v390_v53 = vrot.slane %v326_v32, %v389_v44  ;;  %v2779_v54 = vrot.slane %v562_v40, %v549_v34  ;;  %v2781_v58 = vrot.slane %v550_v43, %v549_v34  ;;  %v2783_v62 = vrot.slane %v558_v45, %v549_v34  ;;  %p2511_p12 = pnand %p2510_p11, %p2662_p5 }
  0x23   : > { %2503 = vset.pattern.permute.xlu0 %v2574_v2  ;;  %v2785_v63 = vrot.slane %v328_v38, %v385_v39  ;;  %p2518_p2 = por %p2517_p1, %p2516_p0 }
  0x24   : > { %532 = vperm.xlu0 %2503, %v333_v6   ;;  %2497 = vset.pattern.permute.xlu1 %v2575_v7  ;;  %p2512_p13 = pneg %p2511_p12 }
  0x25   : > { %349 = vperm.xlu1 %2497, %v331_v3  }
  0x26   : > { %p2519_p3 = pnand %p2518_p2, %p2512_p13 }
  0x28   : > { %544 = vperm.xlu0 %2503, %v336_v8  }
  0x29   : > { %2498 = vset.pattern.permute.xlu1 %v2574_v2 }
  0x2a   : > { %524 = vperm.xlu1 %2498, %v331_v3   ;;  %v2789_v3 = vrot.slane %v394_v51, %v381_v36 }
  0x2c   : > { %2506 = vset.pattern.permute.xlu0 %v2575_v7 }
  0x2d   : > { %339 = vperm.xlu0 %2506, %v329_v0   ;;  %v406_v0 = vrot.slane %v327_v41, %v389_v44 }
  0x2e   : > { %528 = vperm.xlu1 %2498, %v332_v9  }
  0x31   : > { %344 = vperm.xlu0 %2506, %v330_v4   ;;  %v2791_v4 = vrot.slane %v382_v52, %v381_v36 }
  0x32   : > { %2499 = vset.pattern.permute.xlu1 %v2573_v1 }
  0x33   : > { %760 = vperm.xlu1 %2499, %v332_v9  }
  0x35   : > { %354 = vperm.xlu0 %2506, %v332_v9   ;;  %v2801_v9 = vrot.slane %v578_v57, %v549_v34 }
  0x37   : > { %2500 = vset.pattern.permute.xlu1 %v2575_v7  ;;  %3897 = vst [vmem:[#allocation9_spill] sm:$0xff] %v2801_v9 }
  0x38   : > { %958 = vperm.xlu1 %2500, %v948_v10  }
  0x39   : > { %963 = vperm.xlu0 %2506, %v949_v11  }
  0x3c   : > { %359 = vperm.xlu1 %2500, %v333_v6  }
  0x3d   : > { %369 = vperm.xlu0 %2506, %v335_v12  }
  0x40   : > { %364 = vperm.xlu1 %2500, %v334_v5  }
  0x41   : > { %978 = vperm.xlu0 %2506, %v952_v13   ;;  %v2805_v13 = vrot.slane %v328_v38, %v561_v33 }
  0x43   : > { %3898 = vst [vmem:[#allocation10_spill] sm:$0xff] %v2805_v13 }
  0x44   : > { %2501 = vset.pattern.permute.xlu1 %v2574_v2 }
  0x45   : > { %536 = vperm.xlu1 %2501, %v334_v5   ;;  %993 = vperm.xlu0 %2506, %v955_v14   ;;  %v2793_v5 = vrot.slane %v390_v53, %v381_v36  ;;  %v2807_v14 = vrot.slane %v398_v60, %v381_v36 }
  0x47   : > { %3899 = vst [vmem:[#allocation11_spill] sm:$0xff] %v2807_v14 }
  0x49   : > { %2502 = vset.pattern.permute.xlu1 %v2573_v1  ;;  %1211 = vperm.xlu0 %2506, %v1197_v15   ;;  %v2809_v15 = vrot.slane %v566_v61, %v549_v34 }
  0x4a   : > { %764 = vperm.xlu1 %2502, %v333_v6   ;;  %v2795_v6 = vrot.slane %v402_v55, %v381_v36 }
  0x4b   : > { %3900 = vst [vmem:[#allocation12_spill] sm:$0xff] %v2809_v15 }
  0x4c   : > { %3894 = vst [vmem:[#allocation6_spill] sm:$0xff] %v2795_v6 }
  0x4d   : > { %1221 = vperm.xlu0 %2506, %v1199_v16   ;;  %v2811_v16 = vrot.slane %v328_v38, %v389_v44 }
  0x4e   : > { %2504 = vset.pattern.permute.xlu1 %v2575_v7 }
  0x4f   : > { %968 = vperm.xlu1 %2504, %v950_v17   ;;  %3901 = vst [vmem:[#allocation13_spill] sm:$0xff] %v2811_v16  ;;  %v2813_v17 = vrot.slane %v406_v0, %v381_v36 }
  0x51   : > { %1231 = vperm.xlu0 %2506, %v1201_v18   ;;  %3902 = vst [vmem:[#allocation14_spill] sm:$0xff] %v2813_v17 }
  0x53   : > { %973 = vperm.xlu1 %2504, %v951_v19   ;;  %v2817_v19 = vrot.slane %v328_v38, %v393_v42 }
  0x55   : > { %1241 = vperm.xlu0 %2506, %v1203_v20   ;;  %3904 = vst [vmem:[#allocation16_spill] sm:$0xff] %v2817_v19 }
  0x57   : > { %374 = vperm.xlu1 %2504, %v336_v8  }
  0x5b   : > { %2505 = vset.pattern.permute.xlu1 %v2574_v2  ;;  %v2787_v2 = vrot.slane %v386_v50, %v381_v36 }
  0x5c   : > { %540 = vperm.xlu1 %2505, %v335_v12  }
  0x60   : > { %2507 = vset.pattern.permute.xlu1 %v2573_v1  ;;  %v574_v1 = vrot.slane %v327_v41, %v557_v35 }
  0x61   : > { %772 = vperm.xlu1 %2507, %v335_v12   ;;  %v2803_v12 = vrot.slane %v410_v59, %v381_v36 }
  0x62   : > { %v2815_v18 = vrot.slane %v574_v1, %v549_v34 }
  0x64   : > { %3903 = vst [vmem:[#allocation15_spill] sm:$0xff] %v2815_v18 }
  0x65   : > { %776 = vperm.xlu1 %2507, %v336_v8   ;;  %v2799_v8 = vrot.slane %v328_v38, %v557_v35 }
  0x67   : > { %3896 = vst [vmem:[#allocation8_spill] sm:$0xff] %v2799_v8 }
  0x69   : > { %2508 = vset.pattern.permute.xlu1 %v2575_v7  ;;  %v2797_v7 = vrot.slane %v570_v56, %v549_v34 }
  0x6a   : > { %983 = vperm.xlu1 %2508, %v953_v21  }
  0x6b   : > { %3895 = vst [vmem:[#allocation7_spill] sm:$0xff] %v2797_v7 }
  0x6e   : > { %988 = vperm.xlu1 %2508, %v954_v22  }
  0x72   : > { %1206 = vperm.xlu1 %2508, %v1196_v23  }
  0x76   : > { %1216 = vperm.xlu1 %2508, %v1198_v24  }
  0x7a   : > { %1226 = vperm.xlu1 %2508, %v1200_v25  }
  0x7e   : > { %1236 = vperm.xlu1 %2508, %v1202_v27  }
  0x82   : > { %1853 = vperm.xlu1 %2508, %v1850_v28  }
  0x96   : > { %v517_v10 = vpop.permute.xlu1 %516  ;;  %v749_v11 = vpop.permute.xlu0 %748 }
  0x97   : > { %v2820_v20 = vmul.f32 %v2771_v46, %v517_v10  ;;  %v2823_v21 = vmul.f32 %v2773_v47, %v749_v11  ;;  %v2826_v22 = vmul.f32 %v2779_v54, %v517_v10  ;;  %v2829_v23 = vmul.f32 %v2775_v48, %v749_v11 }
  0x98   : > { %v2832_v24 = vmul.f32 %v2781_v58, %v517_v10  ;;  %v2835_v25 = vmul.f32 %v2777_v49, %v749_v11  ;;  %v2838_v27 = vmul.f32 %v2783_v62, %v517_v10  ;;  %v2841_v28 = vmul.f32 %v2785_v63, %v749_v11 }
  0x99   : > { %v2844_v32 = vmul.f32 %v2797_v7, %v517_v10  ;;  %v2847_v33 = vmul.f32 %v2799_v8, %v749_v11  ;;  %v2850_v34 = vmul.f32 %v2801_v9, %v517_v10  ;;  %v2853_v35 = vmul.f32 %v2817_v19, %v749_v11 }
  0x9a   : > { %v521_v29 = vpop.permute.xlu1 %520  ;;  %v757_v31 = vpop.permute.xlu0 %756  ;;  %v2856_v36 = vmul.f32 %v2805_v13, %v749_v11  ;;  %v2859_v37 = vmul.f32 %v2809_v15, %v517_v10  ;;  %v2862_v38 = vmul.f32 %v2811_v16, %v749_v11  ;;  %v2865_v39 = vmul.f32 %v2815_v18, %v517_v10 }
  0x9b   : > { %3905 = vst [vmem:[#allocation17_spill] sm:$0xff] %v2850_v34  ;;  %3906 = vst [vmem:[#allocation18_spill] sm:$0xff] %v2853_v35  ;;  %v2868_v40 = vmul.f32 %v2771_v46, %v521_v29  ;;  %v2871_v41 = vmul.f32 %v2779_v54, %v521_v29  ;;  %v2874_v42 = vmul.f32 %v2781_v58, %v521_v29 }
  0x9c   : > { %3907 = vst [vmem:[#allocation19_spill] sm:$0xff] %v2856_v36  ;;  %3908 = vst [vmem:[#allocation20_spill] sm:$0xff] %v2859_v37  ;;  %v2877_v43 = vmul.f32 %v2783_v62, %v521_v29  ;;  %v2880_v44 = vmul.f32 %v2773_v47, %v757_v31  ;;  %v2883_v45 = vmul.f32 %v2775_v48, %v757_v31 }
  0x9d   : > { %3909 = vst [vmem:[#allocation21_spill] sm:$0xff] %v2862_v38  ;;  %3910 = vst [vmem:[#allocation22_spill] sm:$0xff] %v2865_v39  ;;  %v2886_v50 = vmul.f32 %v2777_v49, %v757_v31  ;;  %v2889_v51 = vmul.f32 %v2785_v63, %v757_v31  ;;  %v2892_v53 = vmul.f32 %v2797_v7, %v521_v29 }
  0x9e   : > { %v769_v52 = vpop.permute.xlu0 %768  ;;  %v2895_v55 = vmul.f32 %v2801_v9, %v521_v29  ;;  %v2898_v56 = vmul.f32 %v2809_v15, %v521_v29  ;;  %v2901_v57 = vmul.f32 %v2817_v19, %v757_v31  ;;  %v2904_v60 = vmul.f32 %v2815_v18, %v521_v29 }
  0x9f   : > { %v753_v59 = vpop.permute.xlu1 %752  ;;  %v2907_v61 = vmul.f32 %v2799_v8, %v757_v31  ;;  %v2910_v0 = vmul.f32 %v2805_v13, %v757_v31  ;;  %v2913_v1 = vmul.f32 %v2811_v16, %v757_v31  ;;  %v2916_v10 = vmul.f32 %v2773_v47, %v769_v52 }
  0xa0   : > { %3911 = vst [vmem:[#allocation23_spill] sm:$0xff] %v2895_v55  ;;  %3912 = vst [vmem:[#allocation24_spill] sm:$0xff] %v2898_v56  ;;  %v2919_v11 = vmul.f32 %v2775_v48, %v769_v52  ;;  %v2922_v26 = vmul.f32 %v2777_v49, %v769_v52  ;;  %v2925_v29 = vmul.f32 %v2785_v63, %v769_v52 }
  0xa1   : > { %3913 = vst [vmem:[#allocation25_spill] sm:$0xff] %v2901_v57  ;;  %3914 = vst [vmem:[#allocation26_spill] sm:$0xff] %v2904_v60  ;;  %v2928_v30 = vmul.f32 %v2773_v47, %v753_v59  ;;  %v2931_v57 = vmul.f32 %v2775_v48, %v753_v59  ;;  %v2934_v31 = vmul.f32 %v2777_v49, %v753_v59 }
  0xa2   : > { %3915 = vst [vmem:[#allocation27_spill] sm:$0xff] %v2907_v61  ;;  %3916 = vst [vmem:[#allocation28_spill] sm:$0xff] %v2910_v0  ;;  %v2940_v0 = vmul.f32 %v2785_v63, %v753_v59  ;;  %v2943_v61 = vmul.f32 %v2799_v8, %v753_v59  ;;  %v2946_v35 = vmul.f32 %v2805_v13, %v753_v59 }
  0xa3   : > { %3917 = vst [vmem:[#allocation29_spill] sm:$0xff] %v2913_v1  ;;  %3918 = vst [vmem:[#allocation30_spill] sm:$0xff] %v2916_v10  ;;  %v2937_v1 = vmul.f32 %v2817_v19, %v753_v59  ;;  %v2949_v60 = vmul.f32 %v2817_v19, %v769_v52  ;;  %v533_v39 = vpop.permute.xlu0 %532  ;;  %v2952_v38 = vmul.f32 %v2811_v16, %v753_v59 }
  0xa4   : > { %3919 = vst [vmem:[#allocation31_spill] sm:$0xff] %v2919_v11  ;;  %3920 = vst [vmem:[#allocation32_spill] sm:$0xff] %v2922_v26  ;;  %v2955_v56 = vmul.f32 %v2799_v8, %v769_v52  ;;  %v2961_v37 = vmul.f32 %v2811_v16, %v769_v52  ;;  %v350_v36 = vpop.permute.xlu1 %349  ;;  %v2967_v19 = vmul.f32 %v2779_v54, %v533_v39 }
  0xa5   : > { %3921 = vst [vmem:[#allocation33_spill] sm:$0xff] %v2925_v29  ;;  %3922 = vst [vmem:[#allocation34_spill] sm:$0xff] %v2937_v1  ;;  %v2958_v1 = vmul.f32 %v2805_v13, %v769_v52  ;;  %v2964_v29 = vmul.f32 %v2771_v46, %v533_v39  ;;  %v2973_v59 = vmul.f32 %v2783_v62, %v533_v39 }
  0xa6   : > { %3923 = vst [vmem:[#allocation35_spill] sm:$0xff] %v2943_v61  ;;  %3924 = vst [vmem:[#allocation36_spill] sm:$0xff] %v2946_v35  ;;  %v467_v52 = vmul.f32 %v2791_v4, %v350_v36  ;;  %v2980_v16 = vmul.f32 %v2795_v6, %v350_v36  ;;  %v2983_v13 = vmul.f32 %v2803_v12, %v350_v36 }
  0xa7   : > { %3925 = vst [vmem:[#allocation37_spill] sm:$0xff] %v2949_v60  ;;  %3926 = vst [vmem:[#allocation38_spill] sm:$0xff] %v2952_v38  ;;  %v2970_v60 = vmul.f32 %v2781_v58, %v533_v39  ;;  %v2986_v8 = vmul.f32 %v2807_v14, %v350_v36  ;;  %v2989_v38 = vmul.f32 %v2813_v17, %v350_v36  ;;  %v545_v35 = vpop.permute.xlu0 %544 }
  0xa8   : > { %3927 = vst [vmem:[#allocation39_spill] sm:$0xff] %v2955_v56  ;;  %3928 = vst [vmem:[#allocation40_spill] sm:$0xff] %v2958_v1  ;;  %v468_v56 = vmul.f32 %v2787_v2, %v350_v36  ;;  %v470_v1 = vmul.f32 %v2789_v3, %v350_v36  ;;  %v2992_v26 = vmul.f32 %v2797_v7, %v533_v39 }
  0xa9   : > { %3929 = vst [vmem:[#allocation41_spill] sm:$0xff] %v2961_v37  ;;  %v469_v37 = vmul.f32 %v2793_v5, %v350_v36  ;;  %3930 = vst [vmem:[#allocation42_spill] sm:$0xff] %v2980_v16  ;;  %v2995_v11 = vmul.f32 %v2801_v9, %v533_v39  ;;  %v2998_v10 = vmul.f32 %v2809_v15, %v533_v39 }
  0xaa   : > { %3931 = vst [vmem:[#allocation43_spill] sm:$0xff] %v2983_v13  ;;  %3932 = vst [vmem:[#allocation44_spill] sm:$0xff] %v2986_v8  ;;  %v3001_v16 = vmul.f32 %v2815_v18, %v533_v39  ;;  %v3004_v13 = vmul.f32 %v2771_v46, %v545_v35  ;;  %v3007_v8 = vmul.f32 %v2779_v54, %v545_v35 }
  0xab   : > { %3933 = vst [vmem:[#allocation45_spill] sm:$0xff] %v2989_v38  ;;  %3934 = vst [vmem:[#allocation46_spill] sm:$0xff] %v2992_v26  ;;  %v3010_v36 = vmul.f32 %v2781_v58, %v545_v35  ;;  %v3013_v26 = vmul.f32 %v2783_v62, %v545_v35  ;;  %v525_v38 = vpop.permute.xlu1 %524  ;;  %v3022_v39 = vmul.f32 %v2809_v15, %v545_v35 }
  0xac   : > { %3935 = vst [vmem:[#allocation47_spill] sm:$0xff] %v2995_v11  ;;  %3936 = vst [vmem:[#allocation48_spill] sm:$0xff] %v2998_v10  ;;  %v3016_v11 = vmul.f32 %v2797_v7, %v545_v35  ;;  %v3019_v10 = vmul.f32 %v2801_v9, %v545_v35  ;;  %v636_v17 = vmul.f32 %v2771_v46, %v525_v38 }
  0xad   : > { %3937 = vst [vmem:[#allocation49_spill] sm:$0xff] %v3001_v16  ;;  %3938 = vst [vmem:[#allocation50_spill] sm:$0xff] %v3004_v13  ;;  %v3025_v16 = vmul.f32 %v2815_v18, %v545_v35  ;;  %v3032_v13 = vmul.f32 %v2797_v7, %v525_v38  ;;  %v3041_v35 = vmul.f32 %v2815_v18, %v525_v38 }
  0xae   : > { %3939 = vst [vmem:[#allocation51_spill] sm:$0xff] %v3007_v8  ;;  %3940 = vst [vmem:[#allocation52_spill] sm:$0xff] %v3010_v36  ;;  %v638_v36 = vmul.f32 %v2779_v54, %v525_v38  ;;  %v635_v8 = vmul.f32 %v2781_v58, %v525_v38 }
  0xaf   : > { %3941 = vst [vmem:[#allocation53_spill] sm:$0xff] %v3013_v26  ;;  %3942 = vst [vmem:[#allocation54_spill] sm:$0xff] %v3016_v11  ;;  %v637_v26 = vmul.f32 %v2783_v62, %v525_v38  ;;  %v3035_v11 = vmul.f32 %v2801_v9, %v525_v38  ;;  %v3045_v61 = vpop.permute.xlu1 %528 }
  0xb0   : > { %3943 = vst [vmem:[#allocation55_spill] sm:$0xff] %v3019_v10  ;;  %3944 = vst [vmem:[#allocation56_spill] sm:$0xff] %v3022_v39  ;;  %v3038_v10 = vmul.f32 %v2809_v15, %v525_v38  ;;  %v700_v39 = vadd.f32 %v636_v17, %v468_v56  ;;  %v702_v14 = vadd.f32 %v638_v36, %v470_v1 }
  0xb1   : > { %3945 = vst [vmem:[#allocation57_spill] sm:$0xff] %v3025_v16  ;;  %3946 = vst [vmem:[#allocation58_spill] sm:$0xff] %v3032_v13  ;;  %v3043_v16 = vpop.permute.xlu0 %339  ;;  %v699_v55 = vadd.f32 %v635_v8, %v467_v52  ;;  %v701_v34 = vadd.f32 %v637_v26, %v469_v37  ;;  %v644_v17 = vmul.f32 %v2771_v46, %v3045_v61 }
  0xb2   : > { %3947 = vst [vmem:[#allocation59_spill] sm:$0xff] %v3035_v11  ;;  %3948 = vst [vmem:[#allocation60_spill] sm:$0xff] %v3038_v10  ;;  %v452_v13 = vmul.f32 %v2787_v2, %v3043_v16  ;;  %v454_v11 = vmul.f32 %v2789_v3, %v3043_v16  ;;  %v451_v10 = vmul.f32 %v2791_v4, %v3043_v16 }
  0xb3   : > { %3949 = vst [vmem:[#allocation61_spill] sm:$0xff] %v3041_v35  ;;  %3950 = vst [vmem:[#allocation62_spill] sm:$0xff] %v3045_v61  ;;  %v453_v38 = vmul.f32 %v2793_v5, %v3043_v16  ;;  %v3058_v8 = vadd.f32 %v2880_v44, %v700_v39  ;;  %v646_v26 = vmul.f32 %v2779_v54, %v3045_v61 }
  0xb4   : > { %v3063_v37 = vadd.f32 %v2883_v45, %v702_v14  ;;  %v684_v56 = vadd.f32 %v2820_v20, %v452_v13  ;;  %v686_v1 = vadd.f32 %v2826_v22, %v454_v11  ;;  %v683_v52 = vadd.f32 %v2832_v24, %v451_v10 }
  0xb5   : > { %3951 = vst [vmem:[#allocation63_spill] sm:$0xff] %v3058_v8  ;;  %v685_v36 = vadd.f32 %v2838_v27, %v453_v38  ;;  %v3069_v35 = vpop.permute.xlu0 %344  ;;  %v643_v44 = vmul.f32 %v2781_v58, %v3045_v61  ;;  %v3074_v39 = vadd.f32 %v2886_v50, %v699_v55  ;;  %v645_v14 = vmul.f32 %v2783_v62, %v3045_v61  ;;  %v3087_v27 = vpop.permute.xlu1 %760 }
  0xb6   : > { %3952 = vst [vmem:[#allocation64_spill] sm:$0xff] %v3063_v37  ;;  %v3079_v45 = vadd.f32 %v2889_v51, %v701_v34  ;;  %v460_v13 = vmul.f32 %v2787_v2, %v3069_v35  ;;  %v885_v20 = vadd.f32 %v2823_v21, %v684_v56  ;;  %v462_v22 = vmul.f32 %v2789_v3, %v3069_v35 }
  0xb7   : > { %3953 = vst [vmem:[#allocation65_spill] sm:$0xff] %v3074_v39  ;;  %v887_v24 = vadd.f32 %v2829_v23, %v686_v1  ;;  %3955 = vst [vmem:[#allocation67_spill] sm:$0xff] %v3087_v27  ;;  %v459_v50 = vmul.f32 %v2791_v4, %v3069_v35  ;;  %v884_v55 = vadd.f32 %v2835_v25, %v683_v52 }
  0xb8   : > { %3954 = vst [vmem:[#allocation66_spill] sm:$0xff] %v3079_v45  ;;  %v461_v34 = vmul.f32 %v2793_v5, %v3069_v35  ;;  %v886_v51 = vadd.f32 %v2841_v28, %v685_v36  ;;  %v692_v10 = vadd.f32 %v2868_v40, %v460_v13  ;;  %v694_v21 = vadd.f32 %v2871_v41, %v462_v22 }
  0xb9   : > { %v845_v11 = vmul.f32 %v2773_v47, %v3087_v27  ;;  %v847_v23 = vmul.f32 %v2775_v48, %v3087_v27  ;;  %v3101_v38 = vpop.permute.xlu0 %354  ;;  %v691_v56 = vadd.f32 %v2874_v42, %v459_v50  ;;  %v844_v1 = vmul.f32 %v2777_v49, %v3087_v27  ;;  %v3121_v50 = vpop.permute.xlu1 %958 }
  0xba   : > { %3956 = vst [vmem:[#allocation68_spill] sm:$0xff] %v3101_v38  ;;  %v693_v25 = vadd.f32 %v2877_v43, %v461_v34  ;;  %v846_v28 = vmul.f32 %v2785_v63, %v3087_v27  ;;  %v893_v40 = vadd.f32 %v2928_v30, %v692_v10  ;;  %v895_v41 = vadd.f32 %v2931_v57, %v694_v21 }
  0xbb   : > { %v476_v52 = vmul.f32 %v2787_v2, %v3101_v38  ;;  %v478_v36 = vmul.f32 %v2789_v3, %v3101_v38  ;;  %v892_v42 = vadd.f32 %v2934_v31, %v691_v56  ;;  %v475_v13 = vmul.f32 %v2791_v4, %v3101_v38 }
  0xbc   : > { %v894_v43 = vadd.f32 %v2940_v0, %v693_v25  ;;  %v477_v22 = vmul.f32 %v2793_v5, %v3101_v38  ;;  %v456_v34 = vmul.f32 %v2795_v6, %v3043_v16  ;;  %v3127_v10 = vmul.f32 %v2795_v6, %v3069_v35 }
  0xbd   : > { %v708_v30 = vadd.f32 %v644_v17, %v476_v52  ;;  %v710_v57 = vadd.f32 %v646_v26, %v478_v36  ;;  %v3129_v31 = vpop.permute.xlu0 %963  ;;  %v997_v0 = vadd.f32 %v3121_v50, %v885_v20  ;;  %v999_v21 = vadd.f32 %v3121_v50, %v887_v24  ;;  %v3141_v20 = vpop.permute.xlu1 %359 }
  0xbe   : > { %3957 = vst [vmem:[#allocation69_spill] sm:$0xff] %v3129_v31  ;;  %v996_v56 = vadd.f32 %v3121_v50, %v884_v55  ;;  %v998_v25 = vadd.f32 %v3121_v50, %v886_v51  ;;  %v1005_v17 = vadd.f32 %v3129_v31, %v893_v40  ;;  %v1007_v26 = vadd.f32 %v3129_v31, %v895_v41 }
  0xbf   : > { %v1004_v52 = vadd.f32 %v3129_v31, %v892_v42  ;;  %v1006_v36 = vadd.f32 %v3129_v31, %v894_v43  ;;  %v1061_v18 = vmul.f32 0.1, %v997_v0  ;;  %v1063_v15 = vmul.f32 0.1, %v999_v21  ;;  %3959 = vst [vmem:[#allocation71_spill] sm:$0xff] %v3141_v20 }
  0xc0   : > { %v1060_v9 = vmul.f32 0.1, %v996_v56  ;;  %v3139_v27 = vadd.f32 %v845_v11, %v708_v30  ;;  %v1069_v24 = vmul.f32 0.1, %v1005_v17  ;;  %v1071_v7 = vmul.f32 0.1, %v1007_v26 }
  0xc1   : > { %v1068_v55 = vmul.f32 0.1, %v1004_v52  ;;  %v3143_v61 = vadd.f32 %v847_v23, %v710_v57  ;;  %v1125_v51 = vmax.f32 %v997_v0, %v1061_v18  ;;  %v1127_v40 = vmax.f32 %v999_v21, %v1063_v15  ;;  %v3147_v30 = vpop.permute.xlu1 %364 }
  0xc2   : > { %3958 = vst [vmem:[#allocation70_spill] sm:$0xff] %v3139_v27  ;;  %v1124_v6 = vmax.f32 %v996_v56, %v1060_v9  ;;  %v1062_v41 = vmul.f32 0.1, %v998_v25  ;;  %v1133_v38 = vmax.f32 %v1005_v17, %v1069_v24  ;;  %v1135_v42 = vmax.f32 %v1007_v26, %v1071_v7  ;;  %3960 = vst [vmem:[#allocation72_spill] sm:$0xff] %v3147_v30 }
  0xc3   : > { %v1132_v45 = vmax.f32 %v1004_v52, %v1068_v55  ;;  %v1070_v43 = vmul.f32 0.1, %v1006_v36  ;;  %v707_v37 = vadd.f32 %v643_v44, %v475_v13  ;;  %v709_v8 = vadd.f32 %v645_v14, %v477_v22  ;;  %v3963_v55 = vld [vmem:[#allocation35_spill] sm:$0xff] }
  0xc4   : > { %v1126_v39 = vmax.f32 %v998_v25, %v1062_v41  ;;  %v484_v11 = vmul.f32 %v2787_v2, %v3141_v20  ;;  %v2322_v27 = vpack.c.bf16 %v1133_v38, %v1125_v51  ;;  %v2338_v31 = vpack.c.bf16 %v1135_v42, %v1127_v40  ;;  %v3964_v41 = vld [vmem:[#allocation17_spill] sm:$0xff] }
  0xc5   : > { %v2324_v23 = vpack.c.bf16 %v1132_v45, %v1124_v6  ;;  %v1134_v57 = vmax.f32 %v1006_v36, %v1070_v43  ;;  %v3149_v18 = vadd.f32 %v844_v1, %v707_v37  ;;  %v3151_v9 = vadd.f32 %v846_v28, %v709_v8  ;;  %v3160_v6 = vpop.permute.xlu0 %369  ;;  %v3183_v13 = vpop.permute.xlu1 %536  ;;  %v3965_v43 = vld [vmem:[#allocation23_spill] sm:$0xff] }
  0xc6   : > { %v492_v7 = vmul.f32 %v2787_v2, %v3147_v30  ;;  %v716_v15 = vadd.f32 %v2964_v29, %v484_v11  ;;  %2323 = vmatprep.subr.bf16.mxu0 %v2322_v27  ;;  %2339 = vmatprep.subr.bf16.mxu1 %v2338_v31  ;;  %v486_v14 = vmul.f32 %v2789_v3, %v3141_v20 }
  0xc7   : > { %v2340_v44 = vpack.c.bf16 %v1134_v57, %v1126_v39  ;;  %v494_v38 = vmul.f32 %v2789_v3, %v3147_v30  ;;  %3961 = vst [vmem:[#allocation73_spill] sm:$0xff] %v3160_v6  ;;  %2325 = vmatpush1.bf16.msra.mxu0 %v2324_v23  ;;  %v483_v8 = vmul.f32 %v2791_v4, %v3141_v20  ;;  %3962 = vst [vmem:[#allocation74_spill] sm:$0xff] %v3183_v13  ;;  %v3968_v23 = vld [vmem:[#allocation31_spill] sm:$0xff] }
  0xc8   : > { %v491_v37 = vmul.f32 %v2791_v4, %v3147_v30  ;;  %v485_v29 = vmul.f32 %v2793_v5, %v3141_v20  ;;  %v493_v39 = vmul.f32 %v2793_v5, %v3147_v30  ;;  %v718_v45 = vadd.f32 %v2967_v19, %v486_v14  ;;  %v3970_v14 = vld [vmem:[#allocation33_spill] sm:$0xff] }
  0xc9   : > { %2341 = vmatpush1.bf16.msra.mxu1 %v2340_v44  ;;  %v3173_v27 = vmul.f32 %v2787_v2, %v3160_v6  ;;  %v3177_v1 = vmul.f32 %v2789_v3, %v3160_v6  ;;  %v3181_v28 = vmul.f32 %v2791_v4, %v3160_v6  ;;  %v715_v22 = vadd.f32 %v2970_v60, %v483_v8 }
  0xca   : > { %v717_v31 = vadd.f32 %v2973_v59, %v485_v29  ;;  %v3189_v19 = vmul.f32 %v2793_v5, %v3160_v6  ;;  %v688_v0 = vadd.f32 %v2844_v32, %v456_v34  ;;  %v660_v21 = vmul.f32 %v2771_v46, %v3183_v13 }
  0xcb   : > { %v662_v56 = vmul.f32 %v2779_v54, %v3183_v13  ;;  %v659_v25 = vmul.f32 %v2781_v58, %v3183_v13  ;;  %v661_v60 = vmul.f32 %v2783_v62, %v3183_v13  ;;  %v696_v59 = vadd.f32 %v2892_v53, %v3127_v10  ;;  %v3211_v10 = vpop.permute.xlu1 %764 }
  0xcc   : > { %v889_v17 = vadd.f32 %v2847_v33, %v688_v0  ;;  %v458_v32 = vmul.f32 %v2803_v12, %v3043_v16  ;;  %v466_v34 = vmul.f32 %v2803_v12, %v3069_v35  ;;  %v724_v26 = vadd.f32 %v660_v21, %v492_v7  ;;  %3966 = vst [vmem:[#allocation35_spill] sm:$0xff] %v3211_v10  ;;  %v3967_v33 = vld [vmem:[#allocation30_spill] sm:$0xff]  ;;  %v3969_v7 = vld [vmem:[#allocation32_spill] sm:$0xff]  ;;  %v3971_v0 = vld [vmem:[#allocation69_spill] sm:$0xff] }
  0xcd   : > { %v726_v52 = vadd.f32 %v662_v56, %v494_v38  ;;  %v723_v36 = vadd.f32 %v659_v25, %v491_v37  ;;  %v725_v24 = vadd.f32 %v661_v60, %v493_v39  ;;  %v897_v51 = vadd.f32 %v3963_v55, %v696_v59  ;;  %v3972_v25 = vld [vmem:[#allocation19_spill] sm:$0xff]  ;;  %v3973_v59 = vld [vmem:[#allocation36_spill] sm:$0xff] }
  0xce   : > { %v1001_v40 = vadd.f32 %v3121_v50, %v889_v17  ;;  %v690_v42 = vadd.f32 %v3964_v41, %v458_v32  ;;  %v698_v53 = vadd.f32 %v3965_v43, %v466_v34  ;;  %v3214_v11 = vadd.f32 %v3967_v33, %v724_v26 }
  0xcf   : > { %v3217_v57 = vadd.f32 %v3968_v23, %v726_v52  ;;  %v3220_v44 = vadd.f32 %v3969_v7, %v723_v36  ;;  %v3223_v38 = vadd.f32 %v3970_v14, %v725_v24  ;;  %v853_v8 = vmul.f32 %v2773_v47, %v3211_v10  ;;  %v3236_v36 = vpop.permute.xlu0 %978  ;;  %v3977_v23 = vld [vmem:[#allocation65_spill] sm:$0xff]  ;;  %v3978_v14 = vld [vmem:[#allocation66_spill] sm:$0xff] }
  0xd0   : > { %v855_v37 = vmul.f32 %v2775_v48, %v3211_v10  ;;  %v852_v29 = vmul.f32 %v2777_v49, %v3211_v10  ;;  %v854_v39 = vmul.f32 %v2785_v63, %v3211_v10  ;;  %v1009_v21 = vadd.f32 %v3971_v0, %v897_v51  ;;  %3974 = vst [vmem:[#allocation17_spill] sm:$0xff] %v3236_v36  ;;  %v3244_v51 = vpop.permute.xlu1 %968 }
  0xd1   : > { %v1065_v56 = vmul.f32 0.1, %v1001_v40  ;;  %v891_v60 = vadd.f32 %v3972_v25, %v690_v42  ;;  %v899_v17 = vadd.f32 %v3973_v59, %v698_v53  ;;  %v917_v32 = vadd.f32 %v853_v8, %v716_v15  ;;  %v3976_v53 = vld [vmem:[#allocation64_spill] sm:$0xff] }
  0xd2   : > { %v919_v34 = vadd.f32 %v855_v37, %v718_v45  ;;  %v916_v26 = vadd.f32 %v852_v29, %v715_v22  ;;  %v918_v52 = vadd.f32 %v854_v39, %v717_v31  ;;  %v1073_v24 = vmul.f32 0.1, %v1009_v21  ;;  %v3975_v31 = vld [vmem:[#allocation63_spill] sm:$0xff] }
  0xd3   : > { %v1129_v55 = vmax.f32 %v1001_v40, %v1065_v56  ;;  %v3239_v41 = vadd.f32 %v3121_v50, %v891_v60  ;;  %v3242_v43 = vadd.f32 %v3971_v0, %v899_v17  ;;  %v3247_v42 = vadd.f32 %v3236_v36, %v917_v32  ;;  %v3979_v17 = vld [vmem:[#allocation11_spill] sm:$0xff] }
  0xd4   : > { %v3250_v15 = vadd.f32 %v3236_v36, %v919_v34  ;;  %v3253_v45 = vadd.f32 %v3236_v36, %v916_v26  ;;  %v3256_v22 = vadd.f32 %v3236_v36, %v918_v52  ;;  %v1013_v40 = vadd.f32 %v3244_v51, %v3975_v31  ;;  %v3277_v34 = vpop.permute.xlu1 %973 }
  0xd5   : > { %v1015_v33 = vadd.f32 %v3244_v51, %v3976_v53  ;;  %v1012_v7 = vadd.f32 %v3244_v51, %v3977_v23  ;;  %v1014_v8 = vadd.f32 %v3244_v51, %v3978_v14  ;;  %v3267_v37 = vmul.f32 0.1, %v3247_v42  ;;  %3980 = vst [vmem:[#allocation23_spill] sm:$0xff] %v3277_v34  ;;  %v3981_v23 = vld [vmem:[#allocation70_spill] sm:$0xff] }
  0xd6   : > { %v3270_v29 = vmul.f32 0.1, %v3250_v15  ;;  %v3273_v39 = vmul.f32 0.1, %v3253_v45  ;;  %v1137_v56 = vmax.f32 %v1009_v21, %v1073_v24  ;;  %v1077_v25 = vmul.f32 0.1, %v1013_v40 }
  0xd7   : > { %v1079_v60 = vmul.f32 0.1, %v1015_v33  ;;  %v1076_v59 = vmul.f32 0.1, %v1012_v7  ;;  %v455_v32 = vmul.f32 %v3979_v17, %v3043_v16  ;;  %v1078_v26 = vmul.f32 0.1, %v1014_v8 }
  0xd8   : > { %v1021_v21 = vadd.f32 %v3277_v34, %v3981_v23  ;;  %v1141_v24 = vmax.f32 %v1013_v40, %v1077_v25  ;;  %v1023_v14 = vadd.f32 %v3277_v34, %v3143_v61  ;;  %v1020_v36 = vadd.f32 %v3277_v34, %v3149_v18  ;;  %v3298_v40 = vpop.permute.xlu1 %374 }
  0xd9   : > { %v1143_v6 = vmax.f32 %v1015_v33, %v1079_v60  ;;  %v1140_v10 = vmax.f32 %v1012_v7, %v1076_v59  ;;  %v1022_v52 = vadd.f32 %v3277_v34, %v3151_v9  ;;  %v1142_v13 = vmax.f32 %v1014_v8, %v1078_v26  ;;  %v3983_v34 = vld [vmem:[#allocation50_spill] sm:$0xff] }
  0xda   : > { %v1085_v31 = vmul.f32 0.1, %v1021_v21  ;;  %v1087_v30 = vmul.f32 0.1, %v1023_v14  ;;  %v3294_v53 = vmul.f32 0.1, %v3256_v22  ;;  %v3296_v20 = vpack.c.bf16 %v1137_v56, %v1129_v55 }
  0xdb   : > { %v1084_v25 = vmul.f32 0.1, %v1020_v36  ;;  %v1086_v61 = vmul.f32 0.1, %v1022_v52  ;;  %v1067_v33 = vmul.f32 0.1, %v3239_v41  ;;  %v463_v18 = vmul.f32 %v3979_v17, %v3069_v35 }
  0xdc   : > { %3982 = vst [vmem:[#allocation30_spill] sm:$0xff] %v3296_v20  ;;  %v1149_v7 = vmax.f32 %v1021_v21, %v1085_v31  ;;  %v1151_v60 = vmax.f32 %v1023_v14, %v1087_v30  ;;  %v508_v8 = vmul.f32 %v2787_v2, %v3298_v40  ;;  %v510_v56 = vmul.f32 %v2789_v3, %v3298_v40  ;;  %v3984_v14 = vld [vmem:[#allocation51_spill] sm:$0xff]  ;;  %v3985_v2 = vld [vmem:[#allocation52_spill] sm:$0xff]  ;;  %v3986_v3 = vld [vmem:[#allocation53_spill] sm:$0xff] }
  0xdd   : > { %v1148_v59 = vmax.f32 %v1020_v36, %v1084_v25  ;;  %v1150_v55 = vmax.f32 %v1022_v52, %v1086_v61  ;;  %v507_v26 = vmul.f32 %v2791_v4, %v3298_v40  ;;  %v509_v30 = vmul.f32 %v2793_v5, %v3298_v40  ;;  %v3316_v52 = vpop.permute.xlu1 %540 }
  0xde   : > { %v2326_v23 = vpack.c.bf16 %v1149_v7, %v1141_v24  ;;  %v2342_v20 = vpack.c.bf16 %v1151_v60, %v1143_v6  ;;  %v740_v17 = vadd.f32 %v3983_v34, %v508_v8  ;;  %v742_v9 = vadd.f32 %v3984_v14, %v510_v56  ;;  %v3987_v34 = vld [vmem:[#allocation20_spill] sm:$0xff] }
  0xdf   : > { %v2328_v31 = vpack.c.bf16 %v1148_v59, %v1140_v10  ;;  %v2344_v21 = vpack.c.bf16 %v1150_v55, %v1142_v13  ;;  %v739_v36 = vadd.f32 %v3985_v2, %v507_v26  ;;  %v741_v25 = vadd.f32 %v3986_v3, %v509_v30  ;;  %v3988_v7 = vld [vmem:[#allocation24_spill] sm:$0xff]  ;;  %v3992_v26 = vld [vmem:[#allocation22_spill] sm:$0xff] }
  0xe0   : > { %2327 = vmatprep.subr.bf16.mxu0 %v2326_v23  ;;  %2343 = vmatprep.subr.bf16.mxu1 %v2342_v20  ;;  %v1075_v4 = vmul.f32 0.1, %v3242_v43  ;;  %v1131_v6 = vmax.f32 %v3239_v41, %v1067_v33  ;;  %v687_v24 = vadd.f32 %v3987_v34, %v455_v32  ;;  %v668_v5 = vmul.f32 %v2771_v46, %v3316_v52  ;;  %v3989_v33 = vld [vmem:[#allocation21_spill] sm:$0xff]  ;;  %v3993_v23 = vld [vmem:[#allocation68_spill] sm:$0xff] }
  0xe1   : > { %2329 = vmatpush1.bf16.msra.mxu0 %v2328_v31  ;;  %2345 = vmatpush1.bf16.msra.mxu1 %v2344_v21  ;;  %v670_v13 = vmul.f32 %v2779_v54, %v3316_v52  ;;  %v667_v10 = vmul.f32 %v2781_v58, %v3316_v52  ;;  %v669_v20 = vmul.f32 %v2783_v62, %v3316_v52  ;;  %v3990_v54 = vld [vmem:[#allocation14_spill] sm:$0xff] }
  0xe2   : > { %v1139_v61 = vmax.f32 %v3242_v43, %v1075_v4  ;;  %v695_v41 = vadd.f32 %v3988_v7, %v463_v18  ;;  %v888_v32 = vadd.f32 %v3989_v33, %v687_v24  ;;  %v732_v60 = vadd.f32 %v668_v5, %v3173_v27  ;;  %v3991_v62 = vld [vmem:[#allocation38_spill] sm:$0xff]  ;;  %v3343_v18 = vpop.permute.xlu1 %772 }
  0xe3   : > { %v734_v8 = vadd.f32 %v670_v13, %v3177_v1  ;;  %v731_v46 = vadd.f32 %v667_v10, %v3181_v28  ;;  %v457_v59 = vmul.f32 %v3990_v54, %v3043_v16  ;;  %v733_v58 = vadd.f32 %v669_v20, %v3189_v19  ;;  %v3994_v28 = vld [vmem:[#allocation6_spill] sm:$0xff]  ;;  %v3996_v16 = vld [vmem:[#allocation7_spill] sm:$0xff] }
  0xe4   : > { %v3339_v55 = vpack.c.bf16 %v1139_v61, %v1131_v6  ;;  %v896_v56 = vadd.f32 %v3991_v62, %v695_v41  ;;  %v1000_v43 = vadd.f32 %v3121_v50, %v888_v32  ;;  %v465_v27 = vmul.f32 %v3990_v54, %v3069_v35  ;;  %v3995_v31 = vld [vmem:[#allocation62_spill] sm:$0xff] }
  0xe5   : > { %v689_v1 = vadd.f32 %v3992_v26, %v457_v59  ;;  %v480_v30 = vmul.f32 %v3994_v28, %v3993_v23  ;;  %v648_v21 = vmul.f32 %v3996_v16, %v3995_v31  ;;  %v869_v19 = vmul.f32 %v2773_v47, %v3343_v18  ;;  %v3997_v6 = vld [vmem:[#allocation26_spill] sm:$0xff] }
  0xe6   : > { %v871_v14 = vmul.f32 %v2775_v48, %v3343_v18  ;;  %v868_v2 = vmul.f32 %v2777_v49, %v3343_v18  ;;  %v870_v35 = vmul.f32 %v2785_v63, %v3343_v18  ;;  %v1008_v3 = vadd.f32 %v3971_v0, %v896_v56  ;;  %v3998_v24 = vld [vmem:[#allocation18_spill] sm:$0xff]  ;;  %v3363_v7 = vpop.permute.xlu1 %776 }
  0xe7   : > { %v1064_v4 = vmul.f32 0.1, %v1000_v43  ;;  %v697_v34 = vadd.f32 %v3997_v6, %v465_v27  ;;  %v890_v5 = vadd.f32 %v3998_v24, %v689_v1  ;;  %v933_v13 = vadd.f32 %v869_v19, %v732_v60  ;;  %v3999_v32 = vld [vmem:[#allocation34_spill] sm:$0xff] }
  0xe8   : > { %v935_v10 = vadd.f32 %v871_v14, %v734_v8  ;;  %v932_v20 = vadd.f32 %v868_v2, %v731_v46  ;;  %v934_v61 = vadd.f32 %v870_v35, %v733_v58  ;;  %v1072_v41 = vmul.f32 0.1, %v1008_v3  ;;  %v4000_v26 = vld [vmem:[#allocation42_spill] sm:$0xff]  ;;  %v3378_v35 = vpop.permute.xlu0 %993 }
  0xe9   : > { %v1128_v33 = vmax.f32 %v1000_v43, %v1064_v4  ;;  %v898_v59 = vadd.f32 %v3999_v32, %v697_v34  ;;  %v1002_v62 = vadd.f32 %v3121_v50, %v890_v5  ;;  %v877_v56 = vmul.f32 %v2773_v47, %v3363_v7  ;;  %v4001_v1 = vld [vmem:[#allocation58_spill] sm:$0xff] }
  0xea   : > { %v879_v27 = vmul.f32 %v2775_v48, %v3363_v7  ;;  %v876_v60 = vmul.f32 %v2777_v49, %v3363_v7  ;;  %v878_v8 = vmul.f32 %v2785_v63, %v3363_v7  ;;  %v1136_v46 = vmax.f32 %v1008_v3, %v1072_v41  ;;  %v3382_v34 = vpop.permute.xlu1 %983 }
  0xeb   : > { %v1010_v58 = vadd.f32 %v3971_v0, %v898_v59  ;;  %v1066_v43 = vmul.f32 0.1, %v1002_v62  ;;  %v704_v19 = vadd.f32 %v4001_v1, %v4000_v26  ;;  %v941_v50 = vadd.f32 %v877_v56, %v740_v17  ;;  %v4003_v56 = vld [vmem:[#allocation8_spill] sm:$0xff] }
  0xec   : > { %v943_v14 = vadd.f32 %v879_v27, %v742_v9  ;;  %v940_v2 = vadd.f32 %v876_v60, %v739_v36  ;;  %v942_v47 = vadd.f32 %v878_v8, %v741_v25  ;;  %v3380_v48 = vpack.c.bf16 %v1136_v46, %v1128_v33 }
  0xed   : > { %v1074_v4 = vmul.f32 0.1, %v1010_v58  ;;  %v1130_v49 = vmax.f32 %v1002_v62, %v1066_v43  ;;  %v712_v6 = vadd.f32 %v648_v21, %v480_v30  ;;  %v1053_v63 = vadd.f32 %v3378_v35, %v941_v50  ;;  %v4002_v62 = vld [vmem:[#allocation67_spill] sm:$0xff] }
  0xee   : > { %v1055_v0 = vadd.f32 %v3378_v35, %v943_v14  ;;  %v1052_v3 = vadd.f32 %v3378_v35, %v940_v2  ;;  %v1054_v17 = vadd.f32 %v3378_v35, %v942_v47  ;;  %v1037_v9 = vadd.f32 %v3382_v34, %v3214_v11  ;;  %v3398_v11 = vpop.permute.xlu1 %988 }
  0xef   : > { %v1039_v36 = vadd.f32 %v3382_v34, %v3217_v57  ;;  %v1036_v25 = vadd.f32 %v3382_v34, %v3220_v44  ;;  %v1038_v30 = vadd.f32 %v3382_v34, %v3223_v38  ;;  %v1117_v21 = vmul.f32 0.1, %v1053_v63 }
  0xf0   : > { %v1119_v24 = vmul.f32 0.1, %v1055_v0  ;;  %v1116_v5 = vmul.f32 0.1, %v1052_v3  ;;  %v1138_v41 = vmax.f32 %v1010_v58, %v1074_v4  ;;  %v1101_v33 = vmul.f32 0.1, %v1037_v9 }
  0xf1   : > { %v1103_v32 = vmul.f32 0.1, %v1039_v36  ;;  %v1100_v59 = vmul.f32 0.1, %v1036_v25  ;;  %v849_v27 = vmul.f32 %v4003_v56, %v4002_v62  ;;  %v1102_v60 = vmul.f32 0.1, %v1038_v30 }
  0xf2   : > { %v1181_v57 = vmax.f32 %v1053_v63, %v1117_v21  ;;  %v1183_v8 = vmax.f32 %v1055_v0, %v1119_v24  ;;  %v1180_v46 = vmax.f32 %v1052_v3, %v1116_v5  ;;  %v1165_v44 = vmax.f32 %v1037_v9, %v1101_v33 }
  0xf3   : > { %v1167_v43 = vmax.f32 %v1039_v36, %v1103_v32  ;;  %v1164_v26 = vmax.f32 %v1036_v25, %v1100_v59  ;;  %v1045_v38 = vadd.f32 %v3398_v11, %v933_v13  ;;  %v1166_v1 = vmax.f32 %v1038_v30, %v1102_v60  ;;  %v4008_v30 = vld [vmem:[#allocation27_spill] sm:$0xff]  ;;  %v4009_v59 = vld [vmem:[#allocation9_spill] sm:$0xff] }
  0xf4   : > { %v1047_v58 = vadd.f32 %v3398_v11, %v935_v10  ;;  %v1044_v50 = vadd.f32 %v3398_v11, %v932_v20  ;;  %v1046_v14 = vadd.f32 %v3398_v11, %v934_v61  ;;  %v4004_v2 = vmax.f32 %v3247_v42, %v3267_v37 }
  0xf5   : > { %v4005_v4 = vmax.f32 %v3250_v15, %v3270_v29  ;;  %v4006_v0 = vmax.f32 %v3253_v45, %v3273_v39  ;;  %v1109_v13 = vmul.f32 0.1, %v1045_v38  ;;  %v4007_v10 = vmax.f32 %v3256_v22, %v3294_v53 }
  0xf6   : > { %v2330_v47 = vpack.c.bf16 %v1165_v44, %v4004_v2  ;;  %v1111_v20 = vmul.f32 0.1, %v1047_v58  ;;  %v1108_v36 = vmul.f32 0.1, %v1044_v50  ;;  %v1110_v61 = vmul.f32 0.1, %v1046_v14 }
  0xf7   : > { %v2346_v63 = vpack.c.bf16 %v1167_v43, %v4005_v4  ;;  %v2332_v3 = vpack.c.bf16 %v1164_v26, %v4006_v0  ;;  %v2348_v9 = vpack.c.bf16 %v1166_v1, %v4007_v10  ;;  %v1173_v42 = vmax.f32 %v1045_v38, %v1109_v13  ;;  %v4011_v43 = vld [vmem:[#allocation43_spill] sm:$0xff]  ;;  %v4015_v1 = vld [vmem:[#allocation30_spill] sm:$0xff]  ;;  %v4018_v0 = vld [vmem:[#allocation44_spill] sm:$0xff] }
  0xf8   : > { %2331 = vmatprep.subr.bf16.mxu0 %v2330_v47  ;;  %v1118_v37 = vmul.f32 0.1, %v1054_v17  ;;  %v2372_v25 = vpack.c.bf16 %v1138_v41, %v1130_v49  ;;  %v905_v15 = vadd.f32 %v4008_v30, %v704_v19  ;;  %v1175_v29 = vmax.f32 %v1047_v58, %v1111_v20  ;;  %v4010_v41 = vld [vmem:[#allocation23_spill] sm:$0xff]  ;;  %v4017_v47 = vld [vmem:[#allocation12_spill] sm:$0xff]  ;;  %v4020_v10 = vld [vmem:[#allocation13_spill] sm:$0xff] }
  0xf9   : > { %2347 = vmatprep.subr.bf16.mxu1 %v2346_v63  ;;  %2333 = vmatpush1.bf16.msra.mxu0 %v2332_v3  ;;  %v1172_v45 = vmax.f32 %v1044_v50, %v1108_v36  ;;  %v1174_v39 = vmax.f32 %v1046_v14, %v1110_v61  ;;  %v2334_v21 = vpack.c.bf16 %v1181_v57, %v1173_v42  ;;  %v4012_v26 = vld [vmem:[#allocation59_spill] sm:$0xff]  ;;  %v4016_v14 = vld [vmem:[#allocation28_spill] sm:$0xff] }
  0xfa   : > { %2349 = vmatpush1.bf16.msra.mxu1 %v2348_v9  ;;  %v1182_v24 = vmax.f32 %v1054_v17, %v1118_v37  ;;  %v913_v5 = vadd.f32 %v849_v27, %v712_v6  ;;  %v1017_v22 = vadd.f32 %v3244_v51, %v905_v15  ;;  %v2350_v53 = vpack.c.bf16 %v1183_v8, %v1175_v29  ;;  %v3428_v6 = vld [vmem:[%s3838_s4] sm:$0xff]  ;;  %v4013_v27 = vld [vmem:[#allocation10_spill] sm:$0xff]  ;;  %v4019_v3 = vld [vmem:[#allocation60_spill] sm:$0xff] }
  0xfb   : > { %v2336_v33 = vpack.c.bf16 %v1180_v46, %v1172_v45  ;;  %v482_v32 = vmul.f32 %v2803_v12, %v3993_v23  ;;  %v650_v49 = vmul.f32 %v4009_v59, %v3995_v31  ;;  %2335 = vmatprep.subr.bf16.mxu0 %v2334_v21  ;;  %v706_v57 = vadd.f32 %v4012_v26, %v4011_v43  ;;  %v4014_v46 = vld [vmem:[#allocation11_spill] sm:$0xff]  ;;  %v4022_v15 = vld [vmem:[#allocation29_spill] sm:$0xff] }
  0xfc   : > { %v2352_v19 = vpack.c.bf16 %v1182_v24, %v1174_v39  ;;  %v1025_v60 = vadd.f32 %v4010_v41, %v913_v5  ;;  %v1081_v44 = vmul.f32 0.1, %v1017_v22  ;;  %2351 = vmatprep.subr.bf16.mxu1 %v2350_v53  ;;  %v851_v8 = vmul.f32 %v4013_v27, %v4002_v62  ;;  %v4021_v37 = vld [vmem:[#allocation15_spill] sm:$0xff]  ;;  %v4023_v45 = vld [vmem:[#allocation45_spill] sm:$0xff] }
  0xfd   : > { %2337 = vmatpush1.bf16.msra.mxu0 %v2336_v33  ;;  %v714_v17 = vadd.f32 %v650_v49, %v482_v32  ;;  %v479_v38 = vmul.f32 %v4014_v46, %v3993_v23  ;;  %v907_v2 = vadd.f32 %v4016_v14, %v706_v57  ;;  %v647_v4 = vmul.f32 %v4017_v47, %v3995_v31  ;;  %v4024_v39 = vld [vmem:[#allocation61_spill] sm:$0xff]  ;;  %v4026_v32 = vld [vmem:[#allocation16_spill] sm:$0xff]  ;;  %v4028_v43 = vld [vmem:[#allocation71_spill] sm:$0xff] }
  0xfe   : > { %2353 = vmatpush1.bf16.msra.mxu1 %v2352_v19  ;;  %2355 = vmatprep.subr.bf16.mxu0 %v4015_v1  ;;  %v1089_v58 = vmul.f32 0.1, %v1025_v60  ;;  %v1145_v50 = vmax.f32 %v1017_v22, %v1081_v44  ;;  %v703_v13 = vadd.f32 %v4019_v3, %v4018_v0  ;;  %v848_v9 = vmul.f32 %v4020_v10, %v4002_v62  ;;  %v4027_v19 = vld [vmem:[#allocation25_spill] sm:$0xff]  ;;  %v4030_v14 = vld [vmem:[#allocation74_spill] sm:$0xff] }
  0xff   : > { %2371 = vmatprep.subr.bf16.mxu1 %v3339_v55  ;;  %v915_v63 = vadd.f32 %v851_v8, %v714_v17  ;;  %v481_v20 = vmul.f32 %v3990_v54, %v3993_v23  ;;  %v1019_v61 = vadd.f32 %v3244_v51, %v907_v2  ;;  %v711_v42 = vadd.f32 %v647_v4, %v479_v38  ;;  %v3457_v23 = vld [vmem:[%s3838_s4 + $0x8] sm:$0xff]  ;;  %v3480_v38 = vld [vmem:[%s3838_s4 + $0x10] sm:$0xff] }
 0x100   : > { %2280 = vmatmul.mubr.msk.f32.vlgmr.msra.gmra.mrb[0].mxu0 %vm1244_vm0, %v3428_v6  ;;  %v1153_v36 = vmax.f32 %v1025_v60, %v1089_v58  ;;  %v649_v55 = vmul.f32 %v4021_v37, %v3995_v31  ;;  %v904_v29 = vadd.f32 %v4022_v15, %v703_v13  ;;  %v705_v21 = vadd.f32 %v4024_v39, %v4023_v45  ;;  %v4029_v58 = vld [vmem:[#allocation72_spill] sm:$0xff]  ;;  %v4031_v4 = vld [vmem:[#allocation46_spill] sm:$0xff]  ;;  %v4033_v39 = vld [vmem:[#allocation39_spill] sm:$0xff] }
 0x101   : > { %2288 = vmatmul.mubr.msk.f32.vlgmr.msra.gmra.mrb[0].mxu1 %vm1244_vm0, %v3428_v6  ;;  %2357 = vmatpush1.bf16.msra.mxu0 %v3380_v48  ;;  %v1027_v30 = vadd.f32 %v4010_v41, %v915_v63  ;;  %v1083_v31 = vmul.f32 0.1, %v1019_v61  ;;  %v4025_v5 = vmov 0.0   ;;  %v912_v22 = vadd.f32 %v848_v9, %v711_v42 }
 0x102   : > { %2373 = vmatpush1.bf16.msra.mxu1 %v2372_v25  ;;  %v2358_v24 = vpack.c.bf16 %v1153_v36, %v1145_v50  ;;  %1339 = vmatprep.mubr.f32.mxu0 %v4025_v5  ;;  %v713_v53 = vadd.f32 %v649_v55, %v481_v20  ;;  %v1016_v33 = vadd.f32 %v3244_v51, %v904_v29  ;;  %v4032_v36 = vld [vmem:[#allocation35_spill] sm:$0xff] }
 0x103   : > { %v1091_v48 = vmul.f32 0.1, %v1027_v30  ;;  %1452 = vmatprep.mubr.f32.mxu1 %v4025_v5  ;;  %v850_v49 = vmul.f32 %v4026_v32, %v4002_v62  ;;  %v906_v60 = vadd.f32 %v4027_v19, %v705_v21  ;;  %v1147_v44 = vmax.f32 %v1019_v61, %v1083_v31  ;;  %v4035_v19 = vld [vmem:[#allocation17_spill] sm:$0xff] }
 0x104   : > { %2359 = vmatprep.subr.bf16.mxu0 %v2358_v24  ;;  %2281 = vmatmul.mubr.msk.f32.gmra.mrb[2].mxu0 %vm1244_vm0, %v3457_v23  ;;  %v1024_v25 = vadd.f32 %v4010_v41, %v912_v22  ;;  %v488_v26 = vmul.f32 %v3994_v28, %v4028_v43  ;;  %v1080_v17 = vmul.f32 0.1, %v1016_v33  ;;  %v496_v50 = vmul.f32 %v3994_v28, %v4029_v58  ;;  %v4034_v24 = vld [vmem:[#allocation47_spill] sm:$0xff]  ;;  %v3507_v22 = vld [vmem:[%s3838_s4 + $0x18] sm:$0xff] }
 0x105   : > { %v1155_v57 = vmax.f32 %v1027_v30, %v1091_v48  ;;  %2289 = vmatmul.mubr.msk.f32.gmra.mrb[2].mxu1 %vm1244_vm0, %v3457_v23  ;;  %v914_v8 = vadd.f32 %v850_v49, %v713_v53  ;;  %v1018_v62 = vadd.f32 %v3244_v51, %v906_v60  ;;  %1345 = vmatprep.mubr.f32.mxu0 %v4025_v5 }
 0x106   : > { %v1088_v1 = vmul.f32 0.1, %v1024_v25  ;;  %v664_v2 = vmul.f32 %v3996_v16, %v4030_v14  ;;  %v720_v63 = vadd.f32 %v4031_v4, %v488_v26  ;;  %1458 = vmatprep.mubr.f32.mxu1 %v4025_v5  ;;  %v1144_v51 = vmax.f32 %v1016_v33, %v1080_v17 }
 0x107   : > { %v2374_v0 = vpack.c.bf16 %v1155_v57, %v1147_v44  ;;  %v1026_v3 = vadd.f32 %v4010_v41, %v914_v8  ;;  %v1082_v13 = vmul.f32 0.1, %v1018_v62  ;;  %v857_v61 = vmul.f32 %v4003_v56, %v4032_v36  ;;  %v4036_v8 = vld [vmem:[#allocation40_spill] sm:$0xff] }
 0x108   : > { %v1152_v9 = vmax.f32 %v1024_v25, %v1088_v1  ;;  %v728_v20 = vadd.f32 %v664_v2, %v496_v50  ;;  %v490_v42 = vmul.f32 %v2803_v12, %v4028_v43  ;;  %2282 = vmatmul.mubr.msk.f32.gmra.mrb[4].mxu0 %vm1244_vm0, %v3480_v38  ;;  %v498_v15 = vmul.f32 %v2803_v12, %v4029_v58  ;;  %v4037_v1 = vld [vmem:[#allocation48_spill] sm:$0xff] }
 0x109   : > { %2375 = vmatprep.subr.bf16.mxu1 %v2374_v0  ;;  %v1090_v55 = vmul.f32 0.1, %v1026_v3  ;;  %v1146_v30 = vmax.f32 %v1018_v62, %v1082_v13  ;;  %v666_v41 = vmul.f32 %v4009_v59, %v4030_v14  ;;  %2290 = vmatmul.mubr.msk.f32.gmra.mrb[4].mxu1 %vm1244_vm0, %v3480_v38  ;;  %v921_v45 = vadd.f32 %v857_v61, %v720_v63 }
 0x10a   : > { %v2360_v29 = vpack.c.bf16 %v1152_v9, %v1144_v51  ;;  %v929_v21 = vadd.f32 %v4033_v39, %v728_v20  ;;  %v722_v31 = vadd.f32 %v4034_v24, %v490_v42  ;;  %1351 = vmatprep.mubr.f32.mxu0 %v4025_v5  ;;  %v859_v33 = vmul.f32 %v4013_v27, %v4032_v36  ;;  %v3532_v51 = vld [vmem:[%s3838_s4 + $0x20] sm:$0xff] }
 0x10b   : > { %v1154_v53 = vmax.f32 %v1026_v3, %v1090_v55  ;;  %v730_v48 = vadd.f32 %v666_v41, %v498_v15  ;;  %v487_v49 = vmul.f32 %v4014_v46, %v4028_v43  ;;  %1464 = vmatprep.mubr.f32.mxu1 %v4025_v5  ;;  %v1033_v60 = vadd.f32 %v4035_v19, %v921_v45  ;;  %v4039_v39 = vld [vmem:[#allocation49_spill] sm:$0xff] }
 0x10c   : > { %2361 = vmatpush1.bf16.msra.mxu0 %v2360_v29  ;;  %v1041_v44 = vadd.f32 %v3382_v34, %v929_v21  ;;  %v495_v25 = vmul.f32 %v4014_v46, %v4029_v58  ;;  %v663_v26 = vmul.f32 %v4017_v47, %v4030_v14  ;;  %v923_v17 = vadd.f32 %v859_v33, %v722_v31 }
 0x10d   : > { %v2376_v57 = vpack.c.bf16 %v1154_v53, %v1146_v30  ;;  %v931_v62 = vadd.f32 %v4036_v8, %v730_v48  ;;  %v719_v50 = vadd.f32 %v4037_v1, %v487_v49  ;;  %2283 = vmatmul.mubr.msk.f32.gmra.mrb[6].mxu0 %vm1244_vm0, %v3507_v22  ;;  %v1097_v2 = vmul.f32 0.1, %v1033_v60  ;;  %2291 = vmatmul.mubr.msk.f32.gmra.mrb[6].mxu1 %vm1244_vm0, %v3507_v22  ;;  %v4038_v30 = vld [vmem:[#allocation41_spill] sm:$0xff] }
 0x10e   : > { %v1105_v4 = vmul.f32 0.1, %v1041_v44  ;;  %v727_v63 = vadd.f32 %v663_v26, %v495_v25  ;;  %v856_v0 = vmul.f32 %v4020_v10, %v4032_v36  ;;  %1357 = vmatprep.mubr.f32.mxu0 %v4025_v5  ;;  %v1035_v3 = vadd.f32 %v4035_v19, %v923_v17  ;;  %1470 = vmatprep.mubr.f32.mxu1 %v4025_v5  ;;  %v4040_v49 = vld [vmem:[#allocation73_spill] sm:$0xff] }
 0x10f   : > { %2377 = vmatpush1.bf16.msra.mxu1 %v2376_v57  ;;  %v1043_v13 = vadd.f32 %v3382_v34, %v931_v62  ;;  %v489_v9 = vmul.f32 %v3990_v54, %v4028_v43  ;;  %v497_v20 = vmul.f32 %v3990_v54, %v4029_v58  ;;  %v1161_v61 = vmax.f32 %v1033_v60, %v1097_v2  ;;  %v4041_v17 = vld [vmem:[#allocation37_spill] sm:$0xff] }
 0x110   : > { %v1169_v42 = vmax.f32 %v1041_v44, %v1105_v4  ;;  %v920_v55 = vadd.f32 %v856_v0, %v719_v50  ;;  %v928_v15 = vadd.f32 %v4038_v30, %v727_v63  ;;  %v1099_v41 = vmul.f32 0.1, %v1035_v3  ;;  %v4042_v63 = vld [vmem:[#allocation54_spill] sm:$0xff]  ;;  %v3578_v0 = vld [vmem:[%s3838_s4 + $0x30] sm:$0xff] }
 0x111   : > { %v1107_v29 = vmul.f32 0.1, %v1043_v13  ;;  %v665_v45 = vmul.f32 %v4021_v37, %v4030_v14  ;;  %v721_v21 = vadd.f32 %v4039_v39, %v489_v9  ;;  %2284 = vmatmul.mubr.msk.f32.gmra.mrb[8].mxu0 %vm1244_vm0, %v3532_v51  ;;  %v858_v31 = vmul.f32 %v4026_v32, %v4032_v36  ;;  %2292 = vmatmul.mubr.msk.f32.gmra.mrb[8].mxu1 %vm1244_vm0, %v3532_v51  ;;  %v3556_v14 = vld [vmem:[%s3838_s4 + $0x28] sm:$0xff] }
 0x112   : > { %v2362_v43 = vpack.c.bf16 %v1169_v42, %v1161_v61  ;;  %v1032_v58 = vadd.f32 %v4035_v19, %v920_v55  ;;  %v1040_v24 = vadd.f32 %v3382_v34, %v928_v15  ;;  %v1163_v53 = vmax.f32 %v1035_v3, %v1099_v41  ;;  %1363 = vmatprep.mubr.f32.mxu0 %v4025_v5 }
 0x113   : > { %v1171_v48 = vmax.f32 %v1043_v13, %v1107_v29  ;;  %v729_v33 = vadd.f32 %v665_v45, %v497_v20  ;;  %v504_v60 = vmul.f32 %v3994_v28, %v4040_v49  ;;  %v922_v36 = vadd.f32 %v858_v31, %v721_v21  ;;  %1476 = vmatprep.mubr.f32.mxu1 %v4025_v5  ;;  %v3601_v45 = vld [vmem:[%s3838_s4 + $0x38] sm:$0xff] }
 0x114   : > { %2363 = vmatprep.subr.bf16.mxu0 %v2362_v43  ;;  %v1096_v44 = vmul.f32 0.1, %v1032_v58  ;;  %v1104_v25 = vmul.f32 0.1, %v1040_v24  ;;  %v512_v26 = vmul.f32 %v3994_v28, %v3298_v40  ;;  %v672_v62 = vmul.f32 %v3996_v16, %v3316_v52 }
 0x115   : > { %v2378_v57 = vpack.c.bf16 %v1171_v48, %v1163_v53  ;;  %v930_v8 = vadd.f32 %v4041_v17, %v729_v33  ;;  %v873_v1 = vmul.f32 %v4003_v56, %v3343_v18  ;;  %2285 = vmatmul.mubr.msk.f32.gmra.mrb[10].mxu0 %vm1244_vm0, %v3556_v14  ;;  %v1034_v4 = vadd.f32 %v4035_v19, %v922_v36 }
 0x116   : > { %v1160_v50 = vmax.f32 %v1032_v58, %v1096_v44  ;;  %v1168_v2 = vmax.f32 %v1040_v24, %v1104_v25  ;;  %v744_v28 = vadd.f32 %v4042_v63, %v512_v26  ;;  %2293 = vmatmul.mubr.msk.f32.gmra.mrb[10].mxu1 %vm1244_vm0, %v3556_v14  ;;  %v736_v3 = vadd.f32 %v672_v62, %v504_v60  ;;  %v4044_v26 = vld [vmem:[#allocation56_spill] sm:$0xff] }
 0x117   : > { %2379 = vmatprep.subr.bf16.mxu1 %v2378_v57  ;;  %v1042_v16 = vadd.f32 %v3382_v34, %v930_v8  ;;  %v881_v13 = vmul.f32 %v4003_v56, %v3363_v7  ;;  %v506_v19 = vmul.f32 %v2803_v12, %v4040_v49  ;;  %v1098_v20 = vmul.f32 0.1, %v1034_v4  ;;  %1369 = vmatprep.mubr.f32.mxu0 %v4025_v5 }
 0x118   : > { %v2364_v9 = vpack.c.bf16 %v1168_v2, %v1160_v50  ;;  %v514_v61 = vmul.f32 %v2803_v12, %v3298_v40  ;;  %v674_v42 = vmul.f32 %v4009_v59, %v3316_v52  ;;  %1482 = vmatprep.mubr.f32.mxu1 %v4025_v5  ;;  %v937_v55 = vadd.f32 %v873_v1, %v736_v3  ;;  %v4043_v12 = vld [vmem:[#allocation55_spill] sm:$0xff] }
 0x119   : > { %v1106_v34 = vmul.f32 0.1, %v1042_v16  ;;  %v945_v30 = vadd.f32 %v881_v13, %v744_v28  ;;  %v875_v56 = vmul.f32 %v4013_v27, %v3343_v18  ;;  %2286 = vmatmul.mubr.msk.f32.gmra.mrb[12].mxu0 %vm1244_vm0, %v3578_v0  ;;  %v1162_v15 = vmax.f32 %v1034_v4, %v1098_v20 }
 0x11a   : > { %2365 = vmatpush1.bf16.msra.mxu0 %v2364_v9  ;;  %v738_v41 = vadd.f32 %v674_v42, %v506_v19  ;;  %v746_v29 = vadd.f32 %v4043_v12, %v514_v61  ;;  %v883_v59 = vmul.f32 %v4013_v27, %v3363_v7  ;;  %v1049_v21 = vadd.f32 %v3398_v11, %v937_v55  ;;  %v4045_v19 = vld [vmem:[#allocation57_spill] sm:$0xff] }
 0x11b   : > { %v1170_v39 = vmax.f32 %v1042_v16, %v1106_v34  ;;  %v1057_v43 = vadd.f32 %v3378_v35, %v945_v30  ;;  %v503_v58 = vmul.f32 %v4014_v46, %v4040_v49  ;;  %2294 = vmatmul.mubr.msk.f32.gmra.mrb[12].mxu1 %vm1244_vm0, %v3578_v0  ;;  %v511_v27 = vmul.f32 %v4014_v46, %v3298_v40 }
 0x11c   : > { %v939_v24 = vadd.f32 %v875_v56, %v738_v41  ;;  %v947_v31 = vadd.f32 %v883_v59, %v746_v29  ;;  %v671_v53 = vmul.f32 %v4017_v47, %v3316_v52  ;;  %1375 = vmatprep.mubr.f32.mxu0 %v4025_v5  ;;  %v1113_v33 = vmul.f32 0.1, %v1049_v21  ;;  %1488 = vmatprep.mubr.f32.mxu1 %v4025_v5 }
 0x11d   : > { %v2380_v48 = vpack.c.bf16 %v1170_v39, %v1162_v15  ;;  %v1121_v60 = vmul.f32 0.1, %v1057_v43  ;;  %v872_v44 = vmul.f32 %v4020_v10, %v3343_v18  ;;  %2287 = vmatmul.mubr.msk.f32.gmra.mrb[14].mxu0 %vm1244_vm0, %v3601_v45  ;;  %v743_v47 = vadd.f32 %v4044_v26, %v511_v27 }
 0x11e   : > { %v1051_v25 = vadd.f32 %v3398_v11, %v939_v24  ;;  %v1059_v46 = vadd.f32 %v3378_v35, %v947_v31  ;;  %v735_v36 = vadd.f32 %v671_v53, %v503_v58  ;;  %1559 = vmatprep.mubr.f32.mxu0 %v4025_v5  ;;  %v1177_v57 = vmax.f32 %v1049_v21, %v1113_v33 }
 0x11f   : > { %2381 = vmatpush1.bf16.msra.mxu1 %v2380_v48  ;;  %v1185_v17 = vmax.f32 %v1057_v43, %v1121_v60  ;;  %v880_v8 = vmul.f32 %v4020_v10, %v3363_v7  ;;  %v505_v62 = vmul.f32 %v3990_v54, %v4040_v49  ;;  %v513_v4 = vmul.f32 %v3990_v54, %v3298_v40 }
 0x120   : > { %v1115_v1 = vmul.f32 0.1, %v1051_v25  ;;  %v1123_v50 = vmul.f32 0.1, %v1059_v46  ;;  %v936_v2 = vadd.f32 %v872_v44, %v735_v36  ;;  %2295 = vmatmul.mubr.msk.f32.gmra.mrb[14].mxu1 %vm1244_vm0, %v3601_v45  ;;  %v673_v16 = vmul.f32 %v4021_v37, %v3316_v52 }
 0x121   : > { %v2366_v63 = vpack.c.bf16 %v1185_v17, %v1177_v57  ;;  %v944_v28 = vadd.f32 %v880_v8, %v743_v47  ;;  %v874_v10 = vmul.f32 %v4026_v32, %v3343_v18  ;;  %1672 = vmatprep.mubr.f32.mxu1 %v4025_v5  ;;  %v745_v9 = vadd.f32 %v4045_v19, %v513_v4 }
 0x122   : > { %v1179_v49 = vmax.f32 %v1051_v25, %v1115_v1  ;;  %v1187_v3 = vmax.f32 %v1059_v46, %v1123_v50  ;;  %v1048_v13 = vadd.f32 %v3398_v11, %v936_v2  ;;  %v737_v54 = vadd.f32 %v673_v16, %v505_v62 }
 0x123   : > { %2367 = vmatprep.subr.bf16.mxu0 %v2366_v63  ;;  %v1056_v40 = vadd.f32 %v3378_v35, %v944_v28  ;;  %v882_v20 = vmul.f32 %v4026_v32, %v3363_v7  ;;  %v3691_v7 = vpop.permute.xlu1 %1206 }
 0x124   : > { %v2382_v61 = vpack.c.bf16 %v1187_v3, %v1179_v49  ;;  %v1112_v52 = vmul.f32 0.1, %v1048_v13  ;;  %v938_v42 = vadd.f32 %v874_v10, %v737_v54 }
 0x125   : > { %v1120_v37 = vmul.f32 0.1, %v1056_v40  ;;  %v946_v18 = vadd.f32 %v882_v20, %v745_v9 }
 0x126   : > { %2383 = vmatprep.subr.bf16.mxu1 %v2382_v61  ;;  %v1176_v34 = vmax.f32 %v1048_v13, %v1112_v52  ;;  %v1050_v30 = vadd.f32 %v3398_v11, %v938_v42 }
 0x127   : > { %v1184_v55 = vmax.f32 %v1056_v40, %v1120_v37  ;;  %v1058_v56 = vadd.f32 %v3378_v35, %v946_v18  ;;  %v3703_v25 = vpop.permute.xlu1 %1216 }
 0x128   : > { %v1114_v41 = vmul.f32 0.1, %v1050_v30 }
 0x129   : > { %v2368_v15 = vpack.c.bf16 %v1184_v55, %v1176_v34  ;;  %v1122_v12 = vmul.f32 0.1, %v1058_v56 }
 0x12a   : > { %v1178_v29 = vmax.f32 %v1050_v30, %v1114_v41 }
 0x12b   : > { %2369 = vmatpush1.bf16.msra.mxu0 %v2368_v15  ;;  %v1186_v59 = vmax.f32 %v1058_v56, %v1122_v12 }
 0x12d   : > { %v2384_v39 = vpack.c.bf16 %v1186_v59, %v1178_v29  ;;  %v3715_v59 = vpop.permute.xlu1 %1226 }
 0x12e   : > { %2296 = vmatmul.mubr.msk.f32.vlgmr.msra.gmra.mrb[16].mxu0 %vm1244_vm0, %v3428_v6 }
 0x12f   : > { %2385 = vmatpush1.bf16.msra.mxu1 %v2384_v39  ;;  %1565 = vmatprep.mubr.f32.mxu0 %v4025_v5 }
 0x132   : > { %2304 = vmatmul.mubr.msk.f32.vlgmr.msra.gmra.mrb[16].mxu1 %vm1244_vm0, %v3428_v6  ;;  %2297 = vmatmul.mubr.msk.f32.gmra.mrb[18].mxu0 %vm1244_vm0, %v3457_v23 }
 0x133   : > { %1678 = vmatprep.mubr.f32.mxu1 %v4025_v5  ;;  %1571 = vmatprep.mubr.f32.mxu0 %v4025_v5 }
 0x136   : > { %2305 = vmatmul.mubr.msk.f32.gmra.mrb[18].mxu1 %vm1244_vm0, %v3457_v23  ;;  %2298 = vmatmul.mubr.msk.f32.gmra.mrb[20].mxu0 %vm1244_vm0, %v3480_v38 }
 0x137   : > { %1684 = vmatprep.mubr.f32.mxu1 %v4025_v5  ;;  %1577 = vmatprep.mubr.f32.mxu0 %v4025_v5 }
 0x13a   : > { %2306 = vmatmul.mubr.msk.f32.gmra.mrb[20].mxu1 %vm1244_vm0, %v3480_v38  ;;  %2299 = vmatmul.mubr.msk.f32.gmra.mrb[22].mxu0 %vm1244_vm0, %v3507_v22 }
 0x13b   : > { %1690 = vmatprep.mubr.f32.mxu1 %v4025_v5  ;;  %1583 = vmatprep.mubr.f32.mxu0 %v4025_v5 }
 0x13e   : > { %2307 = vmatmul.mubr.msk.f32.gmra.mrb[22].mxu1 %vm1244_vm0, %v3507_v22  ;;  %2300 = vmatmul.mubr.msk.f32.gmra.mrb[24].mxu0 %vm1244_vm0, %v3532_v51 }
 0x13f   : > { %1696 = vmatprep.mubr.f32.mxu1 %v4025_v5  ;;  %1589 = vmatprep.mubr.f32.mxu0 %v4025_v5 }
 0x142   : > { %2308 = vmatmul.mubr.msk.f32.gmra.mrb[24].mxu1 %vm1244_vm0, %v3532_v51  ;;  %2301 = vmatmul.mubr.msk.f32.gmra.mrb[26].mxu0 %vm1244_vm0, %v3556_v14 }
 0x143   : > { %1702 = vmatprep.mubr.f32.mxu1 %v4025_v5  ;;  %1595 = vmatprep.mubr.f32.mxu0 %v4025_v5 }
 0x146   : > { %2309 = vmatmul.mubr.msk.f32.gmra.mrb[26].mxu1 %vm1244_vm0, %v3556_v14  ;;  %2302 = vmatmul.mubr.msk.f32.gmra.mrb[28].mxu0 %vm1244_vm0, %v3578_v0  ;;  %v3697_v14 = vpop.permute.xlu0 %1211 }
 0x147   : > { %1708 = vmatprep.mubr.f32.mxu1 %v4025_v5  ;;  %1601 = vmatprep.mubr.f32.mxu0 %v4025_v5 }
 0x14a   : > { %2310 = vmatmul.mubr.msk.f32.gmra.mrb[28].mxu1 %vm1244_vm0, %v3578_v0  ;;  %2303 = vmatmul.mubr.msk.f32.gmra.mrb[30].mxu0 %vm1244_vm0, %v3601_v45  ;;  %v3709_v54 = vpop.permute.xlu0 %1221 }
 0x14b   : > { %1714 = vmatprep.mubr.f32.mxu1 %v4025_v5  ;;  %1923 = vmatprep.mubr.f32.mxu0 %v4025_v5 }
 0x14e   : > { %2311 = vmatmul.mubr.msk.f32.gmra.mrb[30].mxu1 %vm1244_vm0, %v3601_v45 }
 0x14f   : > { %1994 = vmatprep.mubr.f32.mxu1 %v4025_v5 }
 0x1d3   : > { %v1335_v35 = vpop.f32.mrb[0].mxu0 }
 0x1d4   : > { %v1336_v11 = vadd.f32 %v1335_v35, %v3691_v7  ;;  %v1448_v6 = vpop.f32.mrb[0].mxu1  ;;  %v1337_v23 = vpop.f32.mrb[1].mxu0 }
 0x1d5   : > { %v1449_v32 = vadd.f32 %v1448_v6, %v3691_v7  ;;  %v1338_v38 = vadd.f32 %v1337_v23, %v3691_v7  ;;  %v1450_v22 = vpop.f32.mrb[1].mxu1 }
 0x1d6   : > { %v1451_v51 = vadd.f32 %v1450_v22, %v3691_v7  ;;  %v1721_v0 = vmul.f32 0.1, %v1336_v11 }
 0x1d7   : > { %v1723_v45 = vmul.f32 0.1, %v1449_v32  ;;  %v1341_v21 = vpop.f32.mrb[2].mxu0  ;;  %v1722_v43 = vmul.f32 0.1, %v1338_v38 }
 0x1d8   : > { %v1342_v58 = vadd.f32 %v1341_v21, %v3697_v14  ;;  %v1454_v24 = vpop.f32.mrb[2].mxu1  ;;  %v1343_v31 = vpop.f32.mrb[3].mxu0  ;;  %v1724_v33 = vmul.f32 0.1, %v1451_v51  ;;  %v1785_v46 = vmax.f32 %v1336_v11, %v1721_v0 }
 0x1d9   : > { %v1455_v27 = vadd.f32 %v1454_v24, %v3697_v14  ;;  %v1344_v53 = vadd.f32 %v1343_v31, %v3697_v14  ;;  %v1456_v48 = vpop.f32.mrb[3].mxu1  ;;  %v1787_v36 = vmax.f32 %v1449_v32, %v1723_v45  ;;  %v1786_v17 = vmax.f32 %v1338_v38, %v1722_v43 }
 0x1da   : > { %v1729_v60 = vmul.f32 0.1, %v1342_v58  ;;  %v1457_v44 = vadd.f32 %v1456_v48, %v3697_v14  ;;  %v1788_v49 = vmax.f32 %v1451_v51, %v1724_v33 }
 0x1db   : > { %v1731_v26 = vmul.f32 0.1, %v1455_v27  ;;  %v1730_v47 = vmul.f32 0.1, %v1344_v53  ;;  %v1347_v57 = vpop.f32.mrb[4].mxu0 }
 0x1dc   : > { %v1793_v8 = vmax.f32 %v1342_v58, %v1729_v60  ;;  %v1732_v62 = vmul.f32 0.1, %v1457_v44  ;;  %v1348_v1 = vadd.f32 %v1347_v57, %v3703_v25  ;;  %v1460_v50 = vpop.f32.mrb[4].mxu1  ;;  %v1349_v2 = vpop.f32.mrb[5].mxu0 }
 0x1dd   : > { %v1795_v4 = vmax.f32 %v1455_v27, %v1731_v26  ;;  %v1794_v63 = vmax.f32 %v1344_v53, %v1730_v47  ;;  %v1461_v28 = vadd.f32 %v1460_v50, %v3703_v25  ;;  %v1350_v16 = vadd.f32 %v1349_v2, %v3703_v25  ;;  %v1462_v10 = vpop.f32.mrb[5].mxu1  ;;  %v3721_v60 = vpop.permute.xlu0 %1231 }
 0x1de   : > { %v2388_v3 = vpack.c.bf16 %v1793_v8, %v1785_v46  ;;  %v1796_v13 = vmax.f32 %v1457_v44, %v1732_v62  ;;  %v1463_v9 = vadd.f32 %v1462_v10, %v3703_v25  ;;  %v1737_v20 = vmul.f32 0.1, %v1348_v1  ;;  %v3727_v10 = vpop.permute.xlu1 %1236 }
 0x1df   : > { %v2404_v19 = vpack.c.bf16 %v1795_v4, %v1787_v36  ;;  %v2386_v40 = vpack.c.bf16 %v1794_v63, %v1786_v17  ;;  %v1739_v61 = vmul.f32 0.1, %v1461_v28  ;;  %v1738_v42 = vmul.f32 0.1, %v1350_v16 }
 0x1e0   : > { %v1353_v52 = vpop.f32.mrb[6].mxu0  ;;  %v2402_v37 = vpack.c.bf16 %v1796_v13, %v1788_v49  ;;  %v1466_v34 = vpop.f32.mrb[6].mxu1  ;;  %v1740_v41 = vmul.f32 0.1, %v1463_v9  ;;  %v1801_v39 = vmax.f32 %v1348_v1, %v1737_v20 }
 0x1e1   : > { %v1354_v18 = vadd.f32 %v1353_v52, %v3709_v54  ;;  %v1355_v55 = vpop.f32.mrb[7].mxu0  ;;  %2387 = vmatprep.subr.bf16.mxu0 %v2386_v40  ;;  %v1467_v30 = vadd.f32 %v1466_v34, %v3709_v54  ;;  %v1468_v15 = vpop.f32.mrb[7].mxu1  ;;  %v1803_v35 = vmax.f32 %v1461_v28, %v1739_v61  ;;  %v1802_v32 = vmax.f32 %v1350_v16, %v1738_v42 }
 0x1e2   : > { %v1356_v56 = vadd.f32 %v1355_v55, %v3709_v54  ;;  %2403 = vmatprep.subr.bf16.mxu1 %v2402_v37  ;;  %2389 = vmatpush1.bf16.msra.mxu0 %v2388_v3  ;;  %v1469_v29 = vadd.f32 %v1468_v15, %v3709_v54  ;;  %v1804_v27 = vmax.f32 %v1463_v9, %v1740_v41 }
 0x1e3   : > { %v1745_v12 = vmul.f32 0.1, %v1354_v18  ;;  %2405 = vmatpush1.bf16.msra.mxu1 %v2404_v19  ;;  %v1747_v11 = vmul.f32 0.1, %v1467_v30 }
 0x1e4   : > { %v1746_v6 = vmul.f32 0.1, %v1356_v56  ;;  %v1359_v23 = vpop.f32.mrb[8].mxu0  ;;  %v1748_v22 = vmul.f32 0.1, %v1469_v29  ;;  %v1472_v0 = vpop.f32.mrb[8].mxu1 }
 0x1e5   : > { %v1809_v38 = vmax.f32 %v1354_v18, %v1745_v12  ;;  %v1360_v51 = vadd.f32 %v1359_v23, %v3715_v59  ;;  %v1361_v45 = vpop.f32.mrb[9].mxu0  ;;  %v1811_v21 = vmax.f32 %v1467_v30, %v1747_v11  ;;  %v1473_v58 = vadd.f32 %v1472_v0, %v3715_v59  ;;  %v1474_v31 = vpop.f32.mrb[9].mxu1 }
 0x1e6   : > { %v1810_v43 = vmax.f32 %v1356_v56, %v1746_v6  ;;  %v1362_v24 = vadd.f32 %v1361_v45, %v3715_v59  ;;  %v1812_v48 = vmax.f32 %v1469_v29, %v1748_v22  ;;  %v1475_v33 = vadd.f32 %v1474_v31, %v3715_v59  ;;  %v3731_v12 = vpop.permute.xlu0 %1241 }
 0x1e7   : > { %v2392_v53 = vpack.c.bf16 %v1809_v38, %v1801_v39  ;;  %v2408_v44 = vpack.c.bf16 %v1811_v21, %v1803_v35  ;;  %v1753_v46 = vmul.f32 0.1, %v1360_v51  ;;  %v1755_v47 = vmul.f32 0.1, %v1473_v58 }
 0x1e8   : > { %v1365_v36 = vpop.f32.mrb[10].mxu0  ;;  %v2390_v26 = vpack.c.bf16 %v1810_v43, %v1802_v32  ;;  %v2406_v62 = vpack.c.bf16 %v1812_v48, %v1804_v27  ;;  %v1754_v1 = vmul.f32 0.1, %v1362_v24  ;;  %v1756_v63 = vmul.f32 0.1, %v1475_v33 }
 0x1e9   : > { %v1366_v57 = vadd.f32 %v1365_v36, %v3721_v60  ;;  %v1478_v17 = vpop.f32.mrb[10].mxu1  ;;  %v1367_v8 = vpop.f32.mrb[11].mxu0  ;;  %v1817_v49 = vmax.f32 %v1360_v51, %v1753_v46  ;;  %v1819_v9 = vmax.f32 %v1473_v58, %v1755_v47 }
 0x1ea   : > { %v1479_v50 = vadd.f32 %v1478_v17, %v3721_v60  ;;  %v1368_v2 = vadd.f32 %v1367_v8, %v3721_v60  ;;  %v1480_v4 = vpop.f32.mrb[11].mxu1  ;;  %2391 = vmatprep.subr.bf16.mxu0 %v2390_v26  ;;  %2407 = vmatprep.subr.bf16.mxu1 %v2406_v62  ;;  %v1818_v37 = vmax.f32 %v1362_v24, %v1754_v1 }
 0x1eb   : > { %v1761_v28 = vmul.f32 0.1, %v1366_v57  ;;  %v1481_v16 = vadd.f32 %v1480_v4, %v3721_v60  ;;  %2393 = vmatpush1.bf16.msra.mxu0 %v2392_v53  ;;  %2409 = vmatpush1.bf16.msra.mxu1 %v2408_v44  ;;  %v1820_v30 = vmax.f32 %v1475_v33, %v1756_v63  ;;  %v3742_v4 = vld [vmem:[%s3840_s6] sm:$0x3] }
 0x1ec   : > { %v1763_v3 = vmul.f32 0.1, %v1479_v50  ;;  %v1762_v13 = vmul.f32 0.1, %v1368_v2  ;;  %v1371_v19 = vpop.f32.mrb[12].mxu0 }
 0x1ed   : > { %v1825_v40 = vmax.f32 %v1366_v57, %v1761_v28  ;;  %v1764_v20 = vmul.f32 0.1, %v1481_v16  ;;  %v1372_v61 = vadd.f32 %v1371_v19, %v3727_v10  ;;  %v1373_v52 = vpop.f32.mrb[13].mxu0 }
 0x1ee   : > { %v1827_v42 = vmax.f32 %v1479_v50, %v1763_v3  ;;  %v1826_v18 = vmax.f32 %v1368_v2, %v1762_v13  ;;  %v1484_v34 = vpop.f32.mrb[12].mxu1  ;;  %v1374_v55 = vadd.f32 %v1373_v52, %v3727_v10 }
 0x1ef   : > { %v2396_v56 = vpack.c.bf16 %v1825_v40, %v1817_v49  ;;  %v1828_v15 = vmax.f32 %v1481_v16, %v1764_v20  ;;  %v1486_v41 = vpop.f32.mrb[13].mxu1  ;;  %v1485_v39 = vadd.f32 %v1484_v34, %v3727_v10  ;;  %v1769_v6 = vmul.f32 0.1, %v1372_v61 }
 0x1f0   : > { %v2412_v29 = vpack.c.bf16 %v1827_v42, %v1819_v9  ;;  %v1377_v35 = vpop.f32.mrb[14].mxu0  ;;  %v2394_v11 = vpack.c.bf16 %v1826_v18, %v1818_v37  ;;  %v1487_v23 = vadd.f32 %v1486_v41, %v3727_v10  ;;  %v1770_v51 = vmul.f32 0.1, %v1374_v55 }
 0x1f1   : > { %v1378_v32 = vadd.f32 %v1377_v35, %v3731_v12  ;;  %v1379_v38 = vpop.f32.mrb[15].mxu0  ;;  %v2410_v22 = vpack.c.bf16 %v1828_v15, %v1820_v30  ;;  %v1771_v43 = vmul.f32 0.1, %v1485_v39  ;;  %v1833_v27 = vmax.f32 %v1372_v61, %v1769_v6 }
 0x1f2   : > { %v1380_v0 = vadd.f32 %v1379_v38, %v3731_v12  ;;  %2395 = vmatprep.subr.bf16.mxu0 %v2394_v11  ;;  %v1772_v53 = vmul.f32 0.1, %v1487_v23  ;;  %v1834_v44 = vmax.f32 %v1374_v55, %v1770_v51 }
 0x1f3   : > { %v1777_v45 = vmul.f32 0.1, %v1378_v32  ;;  %v1490_v21 = vpop.f32.mrb[14].mxu1  ;;  %2411 = vmatprep.subr.bf16.mxu1 %v2410_v22  ;;  %2397 = vmatpush1.bf16.msra.mxu0 %v2396_v56  ;;  %v1835_v57 = vmax.f32 %v1485_v39, %v1771_v43 }
 0x1f4   : > { %v1491_v58 = vadd.f32 %v1490_v21, %v3731_v12  ;;  %v1778_v24 = vmul.f32 0.1, %v1380_v0  ;;  %v1492_v31 = vpop.f32.mrb[15].mxu1  ;;  %2413 = vmatpush1.bf16.msra.mxu1 %v2412_v29  ;;  %v1836_v62 = vmax.f32 %v1487_v23, %v1772_v53 }
 0x1f5   : > { %v1841_v48 = vmax.f32 %v1378_v32, %v1777_v45  ;;  %v1493_v33 = vadd.f32 %v1492_v31, %v3731_v12 }
 0x1f6   : > { %v1779_v46 = vmul.f32 0.1, %v1491_v58  ;;  %v1842_v36 = vmax.f32 %v1380_v0, %v1778_v24 }
 0x1f7   : > { %v2400_v26 = vpack.c.bf16 %v1841_v48, %v1833_v27  ;;  %v1780_v47 = vmul.f32 0.1, %v1493_v33 }
 0x1f8   : > { %v1843_v17 = vmax.f32 %v1491_v58, %v1779_v46  ;;  %v2398_v8 = vpack.c.bf16 %v1842_v36, %v1834_v44 }
 0x1f9   : > { %v1844_v1 = vmax.f32 %v1493_v33, %v1780_v47 }
 0x1fa   : > { %v2416_v50 = vpack.c.bf16 %v1843_v17, %v1835_v57  ;;  %2399 = vmatprep.subr.bf16.mxu0 %v2398_v8 }
 0x1fb   : > { %v2414_v2 = vpack.c.bf16 %v1844_v1, %v1836_v62  ;;  %2401 = vmatpush1.bf16.msra.mxu0 %v2400_v26 }
 0x1fd   : > { %2415 = vmatprep.subr.bf16.mxu1 %v2414_v2 }
 0x1fe   : > { %2417 = vmatpush1.bf16.msra.mxu1 %v2416_v50  ;;  %2312 = vmatmul.mubr.msk.f32.vlgmr.msra.gmra.mrb[32].mxu0 %vm1244_vm0, %v3742_v4 }
 0x1ff   : > { %2065 = vmatprep.mubr.f32.mxu0 %v4025_v5 }
 0x201   : > { %v1561_v63 = vpop.f32.mrb[16].mxu0  ;;  %2313 = vmatmul.mubr.msk.f32.vlgmr.msra.gmra.mrb[32].mxu1 %vm1244_vm0, %v3742_v4 }
 0x202   : > { %v1562_v28 = vadd.f32 %v1561_v63, %v3691_v7  ;;  %v1563_v16 = vpop.f32.mrb[17].mxu0  ;;  %2136 = vmatprep.mubr.f32.mxu1 %v4025_v5 }
 0x203   : > { %v1564_v49 = vadd.f32 %v1563_v16, %v3691_v7 }
 0x204   : > { %v1725_v19 = vmul.f32 0.1, %v1562_v28 }
 0x205   : > { %v1674_v3 = vpop.f32.mrb[16].mxu1  ;;  %v1567_v13 = vpop.f32.mrb[18].mxu0  ;;  %v1726_v52 = vmul.f32 0.1, %v1564_v49 }
 0x206   : > { %v1675_v9 = vadd.f32 %v1674_v3, %v3691_v7  ;;  %v1676_v40 = vpop.f32.mrb[17].mxu1  ;;  %v1568_v20 = vadd.f32 %v1567_v13, %v3697_v14  ;;  %v1569_v61 = vpop.f32.mrb[19].mxu0  ;;  %v1789_v15 = vmax.f32 %v1562_v28, %v1725_v19 }
 0x207   : > { %v1677_v37 = vadd.f32 %v1676_v40, %v3691_v7  ;;  %v1570_v42 = vadd.f32 %v1569_v61, %v3697_v14  ;;  %v1790_v6 = vmax.f32 %v1564_v49, %v1726_v52 }
 0x208   : > { %v1727_v18 = vmul.f32 0.1, %v1675_v9  ;;  %v1733_v34 = vmul.f32 0.1, %v1568_v20 }
 0x209   : > { %v1728_v55 = vmul.f32 0.1, %v1677_v37  ;;  %v1680_v5 = vpop.f32.mrb[18].mxu1  ;;  %v1734_v30 = vmul.f32 0.1, %v1570_v42  ;;  %v1573_v56 = vpop.f32.mrb[20].mxu0 }
 0x20a   : > { %v1797_v41 = vmax.f32 %v1568_v20, %v1733_v34  ;;  %v1681_v29 = vadd.f32 %v1680_v5, %v3697_v14  ;;  %v1682_v39 = vpop.f32.mrb[19].mxu1  ;;  %v1574_v35 = vadd.f32 %v1573_v56, %v3703_v25  ;;  %v1575_v11 = vpop.f32.mrb[21].mxu0  ;;  %v1791_v51 = vmax.f32 %v1675_v9, %v1727_v18 }
 0x20b   : > { %v1798_v23 = vmax.f32 %v1570_v42, %v1734_v30  ;;  %v1683_v7 = vadd.f32 %v1682_v39, %v3697_v14  ;;  %v1576_v32 = vadd.f32 %v1575_v11, %v3703_v25  ;;  %v1792_v0 = vmax.f32 %v1677_v37, %v1728_v55 }
 0x20c   : > { %v2420_v38 = vpack.c.bf16 %v1797_v41, %v1789_v15  ;;  %v1735_v22 = vmul.f32 0.1, %v1681_v29  ;;  %v1741_v31 = vmul.f32 0.1, %v1574_v35 }
 0x20d   : > { %v1736_v45 = vmul.f32 0.1, %v1683_v7  ;;  %v1686_v21 = vpop.f32.mrb[20].mxu1  ;;  %v1579_v43 = vpop.f32.mrb[22].mxu0  ;;  %v2418_v58 = vpack.c.bf16 %v1798_v23, %v1790_v6  ;;  %v1742_v14 = vmul.f32 0.1, %v1576_v32 }
 0x20e   : > { %v1799_v24 = vmax.f32 %v1681_v29, %v1735_v22  ;;  %v1687_v27 = vadd.f32 %v1686_v21, %v3703_v25  ;;  %v1688_v53 = vpop.f32.mrb[21].mxu1  ;;  %v1580_v48 = vadd.f32 %v1579_v43, %v3709_v54  ;;  %v1581_v33 = vpop.f32.mrb[23].mxu0  ;;  %v1805_v2 = vmax.f32 %v1574_v35, %v1741_v31 }
 0x20f   : > { %v1800_v44 = vmax.f32 %v1683_v7, %v1736_v45  ;;  %v1689_v46 = vadd.f32 %v1688_v53, %v3703_v25  ;;  %v1582_v36 = vadd.f32 %v1581_v33, %v3709_v54  ;;  %2419 = vmatprep.subr.bf16.mxu0 %v2418_v58  ;;  %v1806_v3 = vmax.f32 %v1576_v32, %v1742_v14 }
 0x210   : > { %v2436_v26 = vpack.c.bf16 %v1799_v24, %v1791_v51  ;;  %v1743_v47 = vmul.f32 0.1, %v1687_v27  ;;  %v1749_v57 = vmul.f32 0.1, %v1580_v48  ;;  %2421 = vmatpush1.bf16.msra.mxu0 %v2420_v38 }
 0x211   : > { %v1744_v17 = vmul.f32 0.1, %v1689_v46  ;;  %v1692_v8 = vpop.f32.mrb[22].mxu1  ;;  %v1750_v62 = vmul.f32 0.1, %v1582_v36  ;;  %v2434_v1 = vpack.c.bf16 %v1800_v44, %v1792_v0  ;;  %v1585_v50 = vpop.f32.mrb[24].mxu0 }
 0x212   : > { %v1813_v63 = vmax.f32 %v1580_v48, %v1749_v57  ;;  %v1693_v28 = vadd.f32 %v1692_v8, %v3709_v54  ;;  %v1694_v16 = vpop.f32.mrb[23].mxu1  ;;  %v1586_v49 = vadd.f32 %v1585_v50, %v3715_v59  ;;  %v1587_v25 = vpop.f32.mrb[25].mxu0  ;;  %v1807_v61 = vmax.f32 %v1687_v27, %v1743_v47 }
 0x213   : > { %v1814_v13 = vmax.f32 %v1582_v36, %v1750_v62  ;;  %v1695_v19 = vadd.f32 %v1694_v16, %v3709_v54  ;;  %2435 = vmatprep.subr.bf16.mxu1 %v2434_v1  ;;  %v1588_v9 = vadd.f32 %v1587_v25, %v3715_v59  ;;  %v1808_v52 = vmax.f32 %v1689_v46, %v1744_v17 }
 0x214   : > { %v2424_v40 = vpack.c.bf16 %v1813_v63, %v1805_v2  ;;  %v1751_v20 = vmul.f32 0.1, %v1693_v28  ;;  %2437 = vmatpush1.bf16.msra.mxu1 %v2436_v26  ;;  %v1757_v5 = vmul.f32 0.1, %v1586_v49 }
 0x215   : > { %v1752_v37 = vmul.f32 0.1, %v1695_v19  ;;  %v1698_v42 = vpop.f32.mrb[24].mxu1  ;;  %v1591_v18 = vpop.f32.mrb[26].mxu0  ;;  %v2422_v34 = vpack.c.bf16 %v1814_v13, %v1806_v3  ;;  %v1758_v29 = vmul.f32 0.1, %v1588_v9 }
 0x216   : > { %v1815_v55 = vmax.f32 %v1693_v28, %v1751_v20  ;;  %v1699_v30 = vadd.f32 %v1698_v42, %v3715_v59  ;;  %v1700_v56 = vpop.f32.mrb[25].mxu1  ;;  %v1592_v15 = vadd.f32 %v1591_v18, %v3721_v60  ;;  %v1593_v54 = vpop.f32.mrb[27].mxu0  ;;  %v1821_v0 = vmax.f32 %v1586_v49, %v1757_v5 }
 0x217   : > { %v1816_v41 = vmax.f32 %v1695_v19, %v1752_v37  ;;  %v1701_v39 = vadd.f32 %v1700_v56, %v3715_v59  ;;  %v1594_v35 = vadd.f32 %v1593_v54, %v3721_v60  ;;  %2423 = vmatprep.subr.bf16.mxu0 %v2422_v34  ;;  %v1822_v24 = vmax.f32 %v1588_v9, %v1758_v29 }
 0x218   : > { %v2440_v11 = vpack.c.bf16 %v1815_v55, %v1807_v61  ;;  %v1759_v6 = vmul.f32 0.1, %v1699_v30  ;;  %v1765_v23 = vmul.f32 0.1, %v1592_v15  ;;  %2425 = vmatpush1.bf16.msra.mxu0 %v2424_v40 }
 0x219   : > { %v1760_v7 = vmul.f32 0.1, %v1701_v39  ;;  %v1704_v32 = vpop.f32.mrb[26].mxu1  ;;  %v1766_v38 = vmul.f32 0.1, %v1594_v35  ;;  %v2438_v22 = vpack.c.bf16 %v1816_v41, %v1808_v52  ;;  %v1597_v51 = vpop.f32.mrb[28].mxu0 }
 0x21a   : > { %v1829_v45 = vmax.f32 %v1592_v15, %v1765_v23  ;;  %v1705_v21 = vadd.f32 %v1704_v32, %v3721_v60  ;;  %v1706_v43 = vpop.f32.mrb[27].mxu1  ;;  %v1598_v58 = vadd.f32 %v1597_v51, %v3727_v10  ;;  %v1599_v59 = vpop.f32.mrb[29].mxu0  ;;  %v1823_v44 = vmax.f32 %v1699_v30, %v1759_v6 }
 0x21b   : > { %v1830_v31 = vmax.f32 %v1594_v35, %v1766_v38  ;;  %v1707_v27 = vadd.f32 %v1706_v43, %v3721_v60  ;;  %2439 = vmatprep.subr.bf16.mxu1 %v2438_v22  ;;  %v1600_v53 = vadd.f32 %v1599_v59, %v3727_v10  ;;  %v1824_v14 = vmax.f32 %v1701_v39, %v1760_v7  ;;  %v4046_v22 = vld [vmem:[#allocation5_spill] sm:$0xff] }
 0x21c   : > { %v2428_v48 = vpack.c.bf16 %v1829_v45, %v1821_v0  ;;  %v1767_v33 = vmul.f32 0.1, %v1705_v21  ;;  %2441 = vmatpush1.bf16.msra.mxu1 %v2440_v11  ;;  %v1773_v17 = vmul.f32 0.1, %v1598_v58  ;;  %v1854_v11 = vpop.permute.xlu1 %1853 }
 0x21d   : > { %v1768_v46 = vmul.f32 0.1, %v1707_v27  ;;  %v1710_v36 = vpop.f32.mrb[28].mxu1  ;;  %v1603_v26 = vpop.f32.mrb[30].mxu0  ;;  %v2426_v47 = vpack.c.bf16 %v1830_v31, %v1822_v24  ;;  %v1774_v2 = vmul.f32 0.1, %v1600_v53 }
 0x21e   : > { %v1831_v57 = vmax.f32 %v1705_v21, %v1767_v33  ;;  %v1711_v8 = vadd.f32 %v1710_v36, %v3727_v10  ;;  %v1712_v62 = vpop.f32.mrb[29].mxu1  ;;  %v1604_v1 = vadd.f32 %v1603_v26, %v3731_v12  ;;  %v1605_v60 = vpop.f32.mrb[31].mxu0  ;;  %v1837_v19 = vmax.f32 %v1598_v58, %v1773_v17 }
 0x21f   : > { %v1832_v50 = vmax.f32 %v1707_v27, %v1768_v46  ;;  %v1713_v63 = vadd.f32 %v1712_v62, %v3727_v10  ;;  %v1606_v28 = vadd.f32 %v1605_v60, %v3731_v12  ;;  %2427 = vmatprep.subr.bf16.mxu0 %v2426_v47  ;;  %v1838_v52 = vmax.f32 %v1600_v53, %v1774_v2 }
 0x220   : > { %v2444_v16 = vpack.c.bf16 %v1831_v57, %v1823_v44  ;;  %v1781_v49 = vmul.f32 0.1, %v1604_v1  ;;  %2429 = vmatpush1.bf16.msra.mxu0 %v2428_v48  ;;  %v1775_v9 = vmul.f32 0.1, %v1711_v8 }
 0x221   : > { %v1716_v25 = vpop.f32.mrb[30].mxu1  ;;  %v1782_v3 = vmul.f32 0.1, %v1606_v28  ;;  %v2442_v13 = vpack.c.bf16 %v1832_v50, %v1824_v14  ;;  %v1776_v37 = vmul.f32 0.1, %v1713_v63 }
 0x222   : > { %v1845_v40 = vmax.f32 %v1604_v1, %v1781_v49  ;;  %v1717_v20 = vadd.f32 %v1716_v25, %v3731_v12  ;;  %v1718_v61 = vpop.f32.mrb[31].mxu1  ;;  %v1839_v30 = vmax.f32 %v1711_v8, %v1775_v9 }
 0x223   : > { %v1846_v42 = vmax.f32 %v1606_v28, %v1782_v3  ;;  %v1719_v10 = vadd.f32 %v1718_v61, %v3731_v12  ;;  %2443 = vmatprep.subr.bf16.mxu1 %v2442_v13  ;;  %v1840_v15 = vmax.f32 %v1713_v63, %v1776_v37  ;;  %v2577_v12 = vmov 1983009808  }
 0x224   : > { %v2432_v18 = vpack.c.bf16 %v1845_v40, %v1837_v19  ;;  %v1783_v34 = vmul.f32 0.1, %v1717_v20  ;;  %2445 = vmatpush1.bf16.msra.mxu1 %v2444_v16  ;;  %v2154_v39 = vunpack.c.l.s4 %v2577_v12 }
 0x225   : > { %v1784_v55 = vmul.f32 0.1, %v1719_v10  ;;  %v2430_v5 = vpack.c.bf16 %v1846_v42, %v1838_v52 }
 0x226   : > { %v1847_v56 = vmax.f32 %v1717_v20, %v1783_v34  ;;  %v2155_v35 = vunpack.c.0.s8 %v2154_v39 }
 0x227   : > { %v1848_v54 = vmax.f32 %v1719_v10, %v1784_v55  ;;  %2431 = vmatprep.subr.bf16.mxu0 %v2430_v5 }
 0x228   : > { %v2448_v41 = vpack.c.bf16 %v1847_v56, %v1839_v30  ;;  %2433 = vmatpush1.bf16.msra.mxu0 %v2432_v18  ;;  %v2158_v51 = vsub.s32 %v2155_v35, %v4046_v22 }
 0x229   : > { %v2446_v29 = vpack.c.bf16 %v1848_v54, %v1840_v15 }
 0x22b   : > { %2447 = vmatprep.subr.bf16.mxu1 %v2446_v29  ;;  %2314 = vmatmul.mubr.msk.f32.vlgmr.msra.gmra.mrb[34].mxu0 %vm1244_vm0, %v3742_v4 }
 0x22c   : > { %2449 = vmatpush1.bf16.msra.mxu1 %v2448_v41 }
 0x22f   : > { %2315 = vmatmul.mubr.msk.f32.vlgmr.msra.gmra.mrb[34].mxu1 %vm1244_vm0, %v3742_v4 }
 0x2d1   : > { %v1925_v6 = vpop.f32.mrb[32].mxu0 }
 0x2d2   : > { %v1926_v23 = vadd.f32 %v1925_v6, %v1854_v11  ;;  %v1927_v7 = vpop.f32.mrb[33].mxu0 }
 0x2d3   : > { %v1928_v32 = vadd.f32 %v1927_v7, %v1854_v11 }
 0x2d4   : > { %v1996_v38 = vpop.f32.mrb[32].mxu1 }
 0x2d5   : > { %v1997_v0 = vadd.f32 %v1996_v38, %v1854_v11  ;;  %v2151_v45 = vcombine.low %v1926_v23, %v1928_v32  ;;  %v1998_v21 = vpop.f32.mrb[33].mxu1 }
 0x2d6   : > { %v1999_v43 = vadd.f32 %v1998_v21, %v1854_v11 }
 0x2d7   : > { %v2159_v58 = vrot.slane %v2151_v45, %v2158_v51 }
 0x2d8   : > { %v2152_v59 = vcombine.low %v1997_v0, %v1999_v43 }
 0x2da   : > { %v2166_v4 = vrot.slane %v2152_v59, %v2158_v51 }
 0x2dc   : > { %v2167_v24 = vcombine.low %v2159_v58, %v2166_v4 }
 0x2de   : > { %2187 = vst [vmem:[%s313_s17] sm:$0xff] %v2167_v24 }
 0x2fe   : > { %v2067_v31 = vpop.f32.mrb[34].mxu0 }
 0x2ff   : > { %v2068_v27 = vadd.f32 %v2067_v31, %v1854_v11  ;;  %v2069_v53 = vpop.f32.mrb[35].mxu0 }
 0x300   : > { %v2070_v48 = vadd.f32 %v2069_v53, %v1854_v11 }
 0x302   : > { %v2138_v33 = vpop.f32.mrb[34].mxu1  ;;  %v2168_v44 = vcombine.low %v2068_v27, %v2070_v48 }
 0x303   : > { %v2139_v14 = vadd.f32 %v2138_v33, %v1854_v11  ;;  %v2140_v46 = vpop.f32.mrb[35].mxu1 }
 0x304   : > { %v2141_v36 = vadd.f32 %v2140_v46, %v1854_v11  ;;  %v2176_v26 = vrot.slane %v2168_v44, %v2158_v51 }
 0x306   : > { %v2169_v47 = vcombine.low %v2139_v14, %v2141_v36 }
 0x308   : > { %v2183_v57 = vrot.slane %v2169_v47, %v2158_v51 }
 0x30a   : > { %v2184_v17 = vcombine.low %v2176_v26, %v2183_v57 }
 0x30c   : > { %2188 = vst [vmem:[%s313_s17 + $0x8] sm:$0xff] %v2184_v17 }
 0x30d   : > { %2522 = shalt.err (!%p2519_p3)
}
 0x30e   : > { %s2523_s10 = scalar_lea.hbm %s3792_s22, 256  ;;  %s2527_s17 = scalar_lea.hbm %s3842_s8, 512 }
 0x30f   : > { %p2524_p4 = scmp.ne.s32.totalorder %s3792_s22, %s2523_s10  ;;  %p2528_p9 = scmp.lt.u32.totalorder %s3792_s22, %s3842_s8 }
 0x310   : > { %p2529_p10 = scmp.lt.u32.totalorder %s2527_s17, %s2523_s10  ;;  %p2531_p12 = scmp.lt.u32.totalorder %s2523_s10, %s3792_s22 }
 0x311   : > { %p2525_p7 = pnand %p2524_p4, %p2662_p5 }
 0x312   : > { %p2530_p11 = por %p2529_p10, %p2528_p9 }
 0x313   : > { %p2526_p8 = pneg %p2525_p7 }
 0x314   : > { %p2532_p13 = por %p2531_p12, %p2530_p11 }
 0x316   : > { %p2533_p0 = pnand %p2532_p13, %p2526_p8 }
 0x318   : > { %2536 = shalt.err (!%p2533_p0)
}
 0x319   : > { %2450 = dma.vmem_to_hbm [thread:$0]  (%p2662_p5), %s3794_s19, 256, %s3792_s22, %s2190_s23  }
 0x31a PF: > { %p2456_p1 = scmp.ge.s32.totalorder %s2571_s30, 2  ;;  %s2216_s21 = sand.u32 1, %s2559_s27  }
 0x31b   : > { %s2217_s24 = scalar_lea.sflag [#allocation3], %s2216_s21 }
 0x31c   : > { %p2453_p2 = pnand %p2456_p1, %p2666_p6 }
 0x31e   : > { %2554 = dma.done.wait (!%p2453_p2), %s2217_s24, 256  }
 0x31f   : > { %2556 = vsyncadd (!%p2453_p2), %s2217_s24, 4294967040  ;;  %p18_p3 = scmp.ge.s32.totalorder %s2649_s11, 4   ;;  %s4047_s27 = smov %s2563_s28 }
 0x320   : > { %s4048_s28 = smov %s2567_s29  ;;  %s4049_s29 = smov %s2660_s14 }
 0x321   : > { %s4050_s30 = smov %s2649_s11  ;;  %20 = sbr.rel (!%p18_p3) target bundleno = 3 (0x3), region = 90 }
 0x328   :  { %2222 = vsyncpa [#allocation3], 1 }
 0x329   :  { %2224 = vsyncpa [#allocation3 + $0x1], 1 }

</bundles_post_ra>
